<compile_context>
chip_gen: v5e
topology: v5e:2x2
jax: 0.10.0
libtpu: 0.0.40
codegen_flags: <defaults>
</compile_context>

<pallas_src>
import jax
import jax.numpy as jnp
from jax.experimental import pallas as pl
from jax.experimental.pallas import tpu as pltpu

_VMEM_LIMIT = 32 * 1024 * 1024  # explicit scoped-VMEM budget (>= v5e's 16 MiB default)


# ----------------------------------------------------------------------------
# Shared conv body: 3x3 conv (BN scale pre-folded into w) + BN shift -> f32
# ----------------------------------------------------------------------------
def _conv3x3_body(x_ref, w_ref, shift_ref, xp_ref, acc_ref):
    # x_ref:     (1, H, W, Cin)      bf16 activation, one batch element
    # w_ref:     (3, 3, Cin, Cout)   bf16 HWIO weights, BN scale already folded in
    # shift_ref: (1, Cout)           f32 folded BN shift
    # xp_ref:    (1, H+2, W+2, Cin)  f32 VMEM scratch (SAME zero padding)
    # acc_ref:   (H*W, Cout)         f32 VMEM scratch accumulator
    _, H, W, Cin = x_ref.shape

    # Build the zero-padded input tile in VMEM (replaces the host-side jnp.pad,
    # saving a full HBM pass over the activation).
    xp_ref[...] = jnp.zeros_like(xp_ref)
    xp_ref[0, 1:H + 1, 1:W + 1, :] = x_ref[0].astype(xp_ref.dtype)

    acc_ref[...] = jnp.zeros_like(acc_ref)
    # 3x3 conv as 9 shifted (H*W, Cin) x (Cin, Cout) MXU matmuls with bf16
    # operands and f32 accumulation in a VMEM scratch.  For the residual-block
    # convs Cin = Cout = 128 (lane-dense); the stem's Cin is inherently tiny
    # (RGB-like), matching the real ResNet stem.
    for kh in range(3):
        for kw in range(3):
            patch = xp_ref[0, kh:kh + H, kw:kw + W, :].reshape(H * W, Cin)
            w_tap = w_ref[kh, kw]                                    # (Cin, Cout)
            acc_ref[...] += jnp.dot(patch.astype(w_tap.dtype), w_tap,
                                    preferred_element_type=jnp.float32)
    return acc_ref[...] + shift_ref[...]                             # (H*W, Cout) f32


# ----------------------------------------------------------------------------
# Kernel 1: fused 3x3 conv + folded eval-mode BatchNorm + ReLU
# ----------------------------------------------------------------------------
def _conv_bn_relu_kernel(x_ref, w_ref, shift_ref, o_ref, xp_ref, acc_ref):
    _, H, W, _ = x_ref.shape
    Cout = o_ref.shape[-1]
    y = jnp.maximum(_conv3x3_body(x_ref, w_ref, shift_ref, xp_ref, acc_ref), 0.0)
    o_ref[...] = y.reshape(1, H, W, Cout).astype(o_ref.dtype)


def conv3x3_bn_relu(x, w, shift):
    N, H, W, Cin = x.shape
    Cout = w.shape[-1]
    return pl.pallas_call(
        _conv_bn_relu_kernel,
        out_shape=jax.ShapeDtypeStruct((N, H, W, Cout), jnp.bfloat16),
        grid=(N,),
        in_specs=[
            pl.BlockSpec((1, H, W, Cin), lambda n: (n, 0, 0, 0)),
            pl.BlockSpec((3, 3, Cin, Cout), lambda n: (0, 0, 0, 0)),
            pl.BlockSpec((1, Cout), lambda n: (0, 0)),
        ],
        out_specs=pl.BlockSpec((1, H, W, Cout), lambda n: (n, 0, 0, 0)),
        scratch_shapes=[
            pltpu.VMEM((1, H + 2, W + 2, Cin), jnp.float32),
            pltpu.VMEM((H * W, Cout), jnp.float32),
        ],
        compiler_params=pltpu.CompilerParams(
            dimension_semantics=("parallel",),
            vmem_limit_bytes=_VMEM_LIMIT),
    )(x, w, shift)


# ----------------------------------------------------------------------------
# Kernel 2: 3x3 conv + BN shift + residual add + ReLU + global average pool
#           (fused epilogue -> only (1, Cout) pooled features are written)
# ----------------------------------------------------------------------------
def _conv_bn_add_relu_pool_kernel(x_ref, w_ref, shift_ref, skip_ref, o_ref,
                                  xp_ref, acc_ref):
    _, H, W, _ = x_ref.shape
    Cout = o_ref.shape[-1]
    y = _conv3x3_body(x_ref, w_ref, shift_ref, xp_ref, acc_ref)
    skip = skip_ref[0].reshape(H * W, Cout).astype(jnp.float32)
    y = jnp.maximum(y + skip, 0.0)                                   # skip add + ReLU
    o_ref[...] = jnp.mean(y, axis=0, keepdims=True).reshape(1, 1, Cout)


def conv3x3_bn_add_relu_pool(x, w, shift, skip):
    N, H, W, Cin = x.shape
    Cout = w.shape[-1]
    pooled = pl.pallas_call(
        _conv_bn_add_relu_pool_kernel,
        out_shape=jax.ShapeDtypeStruct((N, 1, Cout), jnp.float32),
        grid=(N,),
        in_specs=[
            pl.BlockSpec((1, H, W, Cin), lambda n: (n, 0, 0, 0)),
            pl.BlockSpec((3, 3, Cin, Cout), lambda n: (0, 0, 0, 0)),
            pl.BlockSpec((1, Cout), lambda n: (0, 0)),
            pl.BlockSpec((1, H, W, Cout), lambda n: (n, 0, 0, 0)),
        ],
        out_specs=pl.BlockSpec((1, 1, Cout), lambda n: (n, 0, 0)),
        scratch_shapes=[
            pltpu.VMEM((1, H + 2, W + 2, Cin), jnp.float32),
            pltpu.VMEM((H * W, Cout), jnp.float32),
        ],
        compiler_params=pltpu.CompilerParams(
            dimension_semantics=("parallel",),
            vmem_limit_bytes=_VMEM_LIMIT),
    )(x, w, shift, skip)
    return pooled.reshape(N, Cout)


# ----------------------------------------------------------------------------
# Kernel 3: batched embed Linear  (flatten -> self.embed)
# ----------------------------------------------------------------------------
def _embed_kernel(x_ref, w_ref, b_ref, o_ref):
    # x: (N, C) bf16;  w: (C, Epad) bf16;  b: (1, Epad) f32;  o: (N, Epad) f32
    o_ref[...] = (jnp.dot(x_ref[...], w_ref[...],
                          preferred_element_type=jnp.float32) + b_ref[...])


def embed_linear(feat, w, b):
    # One batched (N, C) x (C, Epad) matmul; Epad is a multiple of 128 so the
    # output store is lane-dense.  The caller slices back to embed_size.
    N = feat.shape[0]
    Ep = w.shape[-1]
    return pl.pallas_call(
        _embed_kernel,
        out_shape=jax.ShapeDtypeStruct((N, Ep), jnp.float32),
        compiler_params=pltpu.CompilerParams(vmem_limit_bytes=_VMEM_LIMIT),
    )(feat, w, b)


# ----------------------------------------------------------------------------
# EncoderCNN wrapper (frozen backbone -> avg pool -> flatten -> embed)
# ----------------------------------------------------------------------------
class EncoderCNNPallas:
    def __init__(self, in_channels, hidden_channels, embed_size, key):
        ks = jax.random.split(key, 11)
        C = hidden_channels
        f32, bf16 = jnp.float32, jnp.bfloat16
        self.embed_size = embed_size

        def conv_bn(kw, ksc, ksh, cin):
            w = 0.1 * jax.random.normal(kw, (3, 3, cin, C), f32)
            scale = 1.0 + 0.01 * jax.random.normal(ksc, (1, C), f32)
            shift = 0.01 * jax.random.normal(ksh, (1, C), f32)
            # Eval-mode BN: fold gamma/sqrt(var+eps) into the conv weights so the
            # kernels only add the shift after the matmul.  Weights stored bf16.
            return (w * scale.reshape(1, 1, 1, C)).astype(bf16), shift

        self.w_stem, self.sh_stem = conv_bn(ks[0], ks[1], ks[2], in_channels)
        self.w1, self.sh1 = conv_bn(ks[3], ks[4], ks[5], C)
        self.w2, self.sh2 = conv_bn(ks[6], ks[7], ks[8], C)

        # Embed layer (stands in for nn.Linear(resnet.fc.in_features, embed_size)),
        # zero-padded along the output dim to a full 128-lane store.
        e_pad = max(128, ((embed_size + 127) // 128) * 128)
        w_e = 0.1 * jax.random.normal(ks[9], (C, embed_size), f32)
        b_e = 0.01 * jax.random.normal(ks[10], (1, embed_size), f32)
        self.w_embed = (jnp.zeros((C, e_pad), f32)
                        .at[:, :embed_size].set(w_e).astype(bf16))
        self.b_embed = jnp.zeros((1, e_pad), f32).at[:, :embed_size].set(b_e)

    def __call__(self, images_nchw):
        # NCHW -> NHWC (channels on the 128-lane axis); bf16 activation storage.
        x = jnp.transpose(images_nchw, (0, 2, 3, 1)).astype(jnp.bfloat16)
        h = conv3x3_bn_relu(x, self.w_stem, self.sh_stem)            # stem
        r = conv3x3_bn_relu(h, self.w1, self.sh1)                    # block conv1
        feat = conv3x3_bn_add_relu_pool(r, self.w2, self.sh2, h)     # conv2+skip+relu+pool
        out = embed_linear(feat.astype(jnp.bfloat16), self.w_embed, self.b_embed)
        return out[:, :self.embed_size]                              # flatten -> embed


# ----------------------------------------------------------------------------
# Pure-JAX reference (mirrors the bf16 storage/rounding points of the kernels)
# ----------------------------------------------------------------------------
def ref_forward(enc, images_nchw):
    f32 = jnp.float32
    x = jnp.transpose(images_nchw, (0, 2, 3, 1)).astype(jnp.bfloat16).astype(f32)

    def conv(v, w, shift, relu=True):
        y = jax.lax.conv_general_dilated(
            v, w.astype(f32), window_strides=(1, 1), padding="SAME",
            dimension_numbers=("NHWC", "HWIO", "NHWC"))
        y = y + shift.reshape(1, 1, 1, -1)
        return jnp.maximum(y, 0.0) if relu else y

    h = conv(x, enc.w_stem, enc.sh_stem).astype(jnp.bfloat16)        # stem (bf16 store)
    r = conv(h.astype(f32), enc.w1, enc.sh1).astype(jnp.bfloat16)    # block conv1
    y = conv(r.astype(f32), enc.w2, enc.sh2, relu=False)             # block conv2
    y = jnp.maximum(y + h.astype(f32), 0.0)                          # skip + relu
    feat = jnp.mean(y, axis=(1, 2))                                  # global avg pool
    out = jnp.dot(feat.astype(jnp.bfloat16), enc.w_embed,
                  preferred_element_type=f32) + enc.b_embed
    return out[:, :enc.embed_size]


if __name__ == "__main__":
    key = jax.random.PRNGKey(0)
    k_img, k_par = jax.random.split(key)

    N, Cin, H, W = 2, 4, 16, 16      # small stand-in for (N, 3, 224, 224)
    hidden_channels = 128            # lane-aligned stand-in for resnet's 2048 features
    embed_size = 16

    images = jax.random.normal(k_img, (N, Cin, H, W), dtype=jnp.float32)

    encoder = EncoderCNNPallas(Cin, hidden_channels, embed_size, k_par)
    features = jax.block_until_ready(encoder(images))

    assert features.shape == (N, embed_size), features.shape

    expected = ref_forward(encoder, images)
    max_err = float(jnp.max(jnp.abs(features - expected)))
    assert jnp.allclose(features, expected, rtol=1e-2, atol=1e-2), max_err

    print("KERNEL_OK")
</pallas_src>

<mosaic_0001>
module attributes {stable_mosaic.version = 11 : i64} {
  func.func @_conv_bn_relu_kernel(%arg0: i32, %arg1: memref<1x16x16x4xbf16, #tpu.memory_space<vmem>>, %arg2: memref<3x3x4x128xbf16, #tpu.memory_space<vmem>>, %arg3: memref<1x128xf32, #tpu.memory_space<vmem>>, %arg4: memref<1x16x16x128xbf16, #tpu.memory_space<vmem>>, %arg5: memref<1x18x18x4xf32, #tpu.memory_space<vmem>>, %arg6: memref<256x128xf32, #tpu.memory_space<vmem>>) attributes {dimension_semantics = [#tpu.dimension_semantics<parallel>], iteration_bounds = array<i64: 2>, scalar_prefetch = 0 : i64, scratch_operands = 2 : i64, tpu.core_type = #tpu.core_type<tc>, window_params = [{transform_indices = @transform_0, window_bounds = array<i64: 1, 16, 16, 4>}, {pipeline_mode = #tpu.pipeline_mode<synchronous>, transform_indices = @transform_1, window_bounds = array<i64: 3, 3, 4, 128>}, {pipeline_mode = #tpu.pipeline_mode<synchronous>, transform_indices = @transform_2, window_bounds = array<i64: 1, 128>}, {transform_indices = @transform_3, window_bounds = array<i64: 1, 16, 16, 128>}]} {
    %cst = arith.constant 0.000000e+00 : f32
    %0 = vector.broadcast %cst : f32 to vector<1x18x18x4xf32>
    %c0 = arith.constant 0 : index
    %c0_0 = arith.constant 0 : index
    %c0_1 = arith.constant 0 : index
    %c0_2 = arith.constant 0 : index
    %1 = vector.load %arg5[%c0, %c0_0, %c0_1, %c0_2] : memref<1x18x18x4xf32, #tpu.memory_space<vmem>>, vector<1x18x18x4xf32>
    tpu.vector_store %arg5[%c0, %c0_0, %c0_1, %c0_2], %0 {strides = array<i32>} : memref<1x18x18x4xf32, #tpu.memory_space<vmem>>, vector<1x18x18x4xf32>,
    %c0_3 = arith.constant 0 : index
    %c0_4 = arith.constant 0 : index
    %c0_5 = arith.constant 0 : index
    %c0_6 = arith.constant 0 : index
    %2 = vector.load %arg1[%c0_3, %c0_4, %c0_5, %c0_6] : memref<1x16x16x4xbf16, #tpu.memory_space<vmem>>, vector<1x16x16x4xbf16>
    %3 = vector.shape_cast %2 : vector<1x16x16x4xbf16> to vector<16x16x4xbf16>
    %4 = arith.extf %3 : vector<16x16x4xbf16> to vector<16x16x4xf32>
    %c0_7 = arith.constant 0 : index
    %c1 = arith.constant 1 : index
    %c1_8 = arith.constant 1 : index
    %c0_9 = arith.constant 0 : index
    %5 = vector.load %arg5[%c0_7, %c1, %c1_8, %c0_9] : memref<1x18x18x4xf32, #tpu.memory_space<vmem>>, vector<1x16x16x4xf32>
    %6 = vector.shape_cast %5 : vector<1x16x16x4xf32> to vector<16x16x4xf32>
    %7 = vector.shape_cast %4 : vector<16x16x4xf32> to vector<1x16x16x4xf32>
    tpu.vector_store %arg5[%c0_7, %c1, %c1_8, %c0_9], %7 {strides = array<i32>} : memref<1x18x18x4xf32, #tpu.memory_space<vmem>>, vector<1x16x16x4xf32>,
    %cst_10 = arith.constant 0.000000e+00 : f32
    %8 = vector.broadcast %cst_10 : f32 to vector<256x128xf32>
    %c0_11 = arith.constant 0 : index
    %c0_12 = arith.constant 0 : index
    %9 = vector.load %arg6[%c0_11, %c0_12] : memref<256x128xf32, #tpu.memory_space<vmem>>, vector<256x128xf32>
    tpu.vector_store %arg6[%c0_11, %c0_12], %8 {strides = array<i32>} : memref<256x128xf32, #tpu.memory_space<vmem>>, vector<256x128xf32>,
    %c0_13 = arith.constant 0 : index
    %c0_14 = arith.constant 0 : index
    %c0_15 = arith.constant 0 : index
    %c0_16 = arith.constant 0 : index
    %10 = vector.load %arg5[%c0_13, %c0_14, %c0_15, %c0_16] : memref<1x18x18x4xf32, #tpu.memory_space<vmem>>, vector<1x16x16x4xf32>
    %11 = vector.shape_cast %10 : vector<1x16x16x4xf32> to vector<16x16x4xf32>
    %12 = vector.shape_cast %11 : vector<16x16x4xf32> to vector<256x4xf32>
    %c0_17 = arith.constant 0 : index
    %c0_18 = arith.constant 0 : index
    %c0_19 = arith.constant 0 : index
    %c0_20 = arith.constant 0 : index
    %13 = vector.load %arg2[%c0_17, %c0_18, %c0_19, %c0_20] : memref<3x3x4x128xbf16, #tpu.memory_space<vmem>>, vector<1x1x4x128xbf16>
    %14 = vector.shape_cast %13 : vector<1x1x4x128xbf16> to vector<4x128xbf16>
    %c0_21 = arith.constant 0 : index
    %c0_22 = arith.constant 0 : index
    %15 = vector.load %arg6[%c0_21, %c0_22] : memref<256x128xf32, #tpu.memory_space<vmem>>, vector<256x128xf32>
    %16 = arith.truncf %12 : vector<256x4xf32> to vector<256x4xbf16>
    %cst_23 = arith.constant dense<0.000000e+00> : vector<256x128xf32>
    %17 = tpu.matmul %16, %14, %cst_23 {dimension_numbers = #tpu.dot_dimension_numbers<[1], [0], [0], [1], [0, 0, 1, 1], [], []>} : vector<256x4xbf16>, vector<4x128xbf16>, vector<256x128xf32> -> vector<256x128xf32>
    %18 = arith.addf %15, %17 : vector<256x128xf32>
    %c0_24 = arith.constant 0 : index
    %c0_25 = arith.constant 0 : index
    %19 = vector.load %arg6[%c0_24, %c0_25] : memref<256x128xf32, #tpu.memory_space<vmem>>, vector<256x128xf32>
    tpu.vector_store %arg6[%c0_24, %c0_25], %18 {strides = array<i32>} : memref<256x128xf32, #tpu.memory_space<vmem>>, vector<256x128xf32>,
    %c0_26 = arith.constant 0 : index
    %c0_27 = arith.constant 0 : index
    %c1_28 = arith.constant 1 : index
    %c0_29 = arith.constant 0 : index
    %20 = vector.load %arg5[%c0_26, %c0_27, %c1_28, %c0_29] : memref<1x18x18x4xf32, #tpu.memory_space<vmem>>, vector<1x16x16x4xf32>
    %21 = vector.shape_cast %20 : vector<1x16x16x4xf32> to vector<16x16x4xf32>
    %22 = vector.shape_cast %21 : vector<16x16x4xf32> to vector<256x4xf32>
    %c0_30 = arith.constant 0 : index
    %c1_31 = arith.constant 1 : index
    %c0_32 = arith.constant 0 : index
    %c0_33 = arith.constant 0 : index
    %23 = vector.load %arg2[%c0_30, %c1_31, %c0_32, %c0_33] : memref<3x3x4x128xbf16, #tpu.memory_space<vmem>>, vector<1x1x4x128xbf16>
    %24 = vector.shape_cast %23 : vector<1x1x4x128xbf16> to vector<4x128xbf16>
    %c0_34 = arith.constant 0 : index
    %c0_35 = arith.constant 0 : index
    %25 = vector.load %arg6[%c0_34, %c0_35] : memref<256x128xf32, #tpu.memory_space<vmem>>, vector<256x128xf32>
    %26 = arith.truncf %22 : vector<256x4xf32> to vector<256x4xbf16>
    %cst_36 = arith.constant dense<0.000000e+00> : vector<256x128xf32>
    %27 = tpu.matmul %26, %24, %cst_36 {dimension_numbers = #tpu.dot_dimension_numbers<[1], [0], [0], [1], [0, 0, 1, 1], [], []>} : vector<256x4xbf16>, vector<4x128xbf16>, vector<256x128xf32> -> vector<256x128xf32>
    %28 = arith.addf %25, %27 : vector<256x128xf32>
    %c0_37 = arith.constant 0 : index
    %c0_38 = arith.constant 0 : index
    %29 = vector.load %arg6[%c0_37, %c0_38] : memref<256x128xf32, #tpu.memory_space<vmem>>, vector<256x128xf32>
    tpu.vector_store %arg6[%c0_37, %c0_38], %28 {strides = array<i32>} : memref<256x128xf32, #tpu.memory_space<vmem>>, vector<256x128xf32>,
    %c0_39 = arith.constant 0 : index
    %c0_40 = arith.constant 0 : index
    %c2 = arith.constant 2 : index
    %c0_41 = arith.constant 0 : index
    %30 = vector.load %arg5[%c0_39, %c0_40, %c2, %c0_41] : memref<1x18x18x4xf32, #tpu.memory_space<vmem>>, vector<1x16x16x4xf32>
    %31 = vector.shape_cast %30 : vector<1x16x16x4xf32> to vector<16x16x4xf32>
    %32 = vector.shape_cast %31 : vector<16x16x4xf32> to vector<256x4xf32>
    %c0_42 = arith.constant 0 : index
    %c2_43 = arith.constant 2 : index
    %c0_44 = arith.constant 0 : index
    %c0_45 = arith.constant 0 : index
    %33 = vector.load %arg2[%c0_42, %c2_43, %c0_44, %c0_45] : memref<3x3x4x128xbf16, #tpu.memory_space<vmem>>, vector<1x1x4x128xbf16>
    %34 = vector.shape_cast %33 : vector<1x1x4x128xbf16> to vector<4x128xbf16>
    %c0_46 = arith.constant 0 : index
    %c0_47 = arith.constant 0 : index
    %35 = vector.load %arg6[%c0_46, %c0_47] : memref<256x128xf32, #tpu.memory_space<vmem>>, vector<256x128xf32>
    %36 = arith.truncf %32 : vector<256x4xf32> to vector<256x4xbf16>
    %cst_48 = arith.constant dense<0.000000e+00> : vector<256x128xf32>
    %37 = tpu.matmul %36, %34, %cst_48 {dimension_numbers = #tpu.dot_dimension_numbers<[1], [0], [0], [1], [0, 0, 1, 1], [], []>} : vector<256x4xbf16>, vector<4x128xbf16>, vector<256x128xf32> -> vector<256x128xf32>
    %38 = arith.addf %35, %37 : vector<256x128xf32>
    %c0_49 = arith.constant 0 : index
    %c0_50 = arith.constant 0 : index
    %39 = vector.load %arg6[%c0_49, %c0_50] : memref<256x128xf32, #tpu.memory_space<vmem>>, vector<256x128xf32>
    tpu.vector_store %arg6[%c0_49, %c0_50], %38 {strides = array<i32>} : memref<256x128xf32, #tpu.memory_space<vmem>>, vector<256x128xf32>,
    %c0_51 = arith.constant 0 : index
    %c1_52 = arith.constant 1 : index
    %c0_53 = arith.constant 0 : index
    %c0_54 = arith.constant 0 : index
    %40 = vector.load %arg5[%c0_51, %c1_52, %c0_53, %c0_54] : memref<1x18x18x4xf32, #tpu.memory_space<vmem>>, vector<1x16x16x4xf32>
    %41 = vector.shape_cast %40 : vector<1x16x16x4xf32> to vector<16x16x4xf32>
    %42 = vector.shape_cast %41 : vector<16x16x4xf32> to vector<256x4xf32>
    %c1_55 = arith.constant 1 : index
    %c0_56 = arith.constant 0 : index
    %c0_57 = arith.constant 0 : index
    %c0_58 = arith.constant 0 : index
    %43 = vector.load %arg2[%c1_55, %c0_56, %c0_57, %c0_58] : memref<3x3x4x128xbf16, #tpu.memory_space<vmem>>, vector<1x1x4x128xbf16>
    %44 = vector.shape_cast %43 : vector<1x1x4x128xbf16> to vector<4x128xbf16>
    %c0_59 = arith.constant 0 : index
    %c0_60 = arith.constant 0 : index
    %45 = vector.load %arg6[%c0_59, %c0_60] : memref<256x128xf32, #tpu.memory_space<vmem>>, vector<256x128xf32>
    %46 = arith.truncf %42 : vector<256x4xf32> to vector<256x4xbf16>
    %cst_61 = arith.constant dense<0.000000e+00> : vector<256x128xf32>
    %47 = tpu.matmul %46, %44, %cst_61 {dimension_numbers = #tpu.dot_dimension_numbers<[1], [0], [0], [1], [0, 0, 1, 1], [], []>} : vector<256x4xbf16>, vector<4x128xbf16>, vector<256x128xf32> -> vector<256x128xf32>
    %48 = arith.addf %45, %47 : vector<256x128xf32>
    %c0_62 = arith.constant 0 : index
    %c0_63 = arith.constant 0 : index
    %49 = vector.load %arg6[%c0_62, %c0_63] : memref<256x128xf32, #tpu.memory_space<vmem>>, vector<256x128xf32>
    tpu.vector_store %arg6[%c0_62, %c0_63], %48 {strides = array<i32>} : memref<256x128xf32, #tpu.memory_space<vmem>>, vector<256x128xf32>,
    %c0_64 = arith.constant 0 : index
    %c1_65 = arith.constant 1 : index
    %c1_66 = arith.constant 1 : index
    %c0_67 = arith.constant 0 : index
    %50 = vector.load %arg5[%c0_64, %c1_65, %c1_66, %c0_67] : memref<1x18x18x4xf32, #tpu.memory_space<vmem>>, vector<1x16x16x4xf32>
    %51 = vector.shape_cast %50 : vector<1x16x16x4xf32> to vector<16x16x4xf32>
    %52 = vector.shape_cast %51 : vector<16x16x4xf32> to vector<256x4xf32>
    %c1_68 = arith.constant 1 : index
    %c1_69 = arith.constant 1 : index
    %c0_70 = arith.constant 0 : index
    %c0_71 = arith.constant 0 : index
    %53 = vector.load %arg2[%c1_68, %c1_69, %c0_70, %c0_71] : memref<3x3x4x128xbf16, #tpu.memory_space<vmem>>, vector<1x1x4x128xbf16>
    %54 = vector.shape_cast %53 : vector<1x1x4x128xbf16> to vector<4x128xbf16>
    %c0_72 = arith.constant 0 : index
    %c0_73 = arith.constant 0 : index
    %55 = vector.load %arg6[%c0_72, %c0_73] : memref<256x128xf32, #tpu.memory_space<vmem>>, vector<256x128xf32>
    %56 = arith.truncf %52 : vector<256x4xf32> to vector<256x4xbf16>
    %cst_74 = arith.constant dense<0.000000e+00> : vector<256x128xf32>
    %57 = tpu.matmul %56, %54, %cst_74 {dimension_numbers = #tpu.dot_dimension_numbers<[1], [0], [0], [1], [0, 0, 1, 1], [], []>} : vector<256x4xbf16>, vector<4x128xbf16>, vector<256x128xf32> -> vector<256x128xf32>
    %58 = arith.addf %55, %57 : vector<256x128xf32>
    %c0_75 = arith.constant 0 : index
    %c0_76 = arith.constant 0 : index
    %59 = vector.load %arg6[%c0_75, %c0_76] : memref<256x128xf32, #tpu.memory_space<vmem>>, vector<256x128xf32>
    tpu.vector_store %arg6[%c0_75, %c0_76], %58 {strides = array<i32>} : memref<256x128xf32, #tpu.memory_space<vmem>>, vector<256x128xf32>,
    %c0_77 = arith.constant 0 : index
    %c1_78 = arith.constant 1 : index
    %c2_79 = arith.constant 2 : index
    %c0_80 = arith.constant 0 : index
    %60 = vector.load %arg5[%c0_77, %c1_78, %c2_79, %c0_80] : memref<1x18x18x4xf32, #tpu.memory_space<vmem>>, vector<1x16x16x4xf32>
    %61 = vector.shape_cast %60 : vector<1x16x16x4xf32> to vector<16x16x4xf32>
    %62 = vector.shape_cast %61 : vector<16x16x4xf32> to vector<256x4xf32>
    %c1_81 = arith.constant 1 : index
    %c2_82 = arith.constant 2 : index
    %c0_83 = arith.constant 0 : index
    %c0_84 = arith.constant 0 : index
    %63 = vector.load %arg2[%c1_81, %c2_82, %c0_83, %c0_84] : memref<3x3x4x128xbf16, #tpu.memory_space<vmem>>, vector<1x1x4x128xbf16>
    %64 = vector.shape_cast %63 : vector<1x1x4x128xbf16> to vector<4x128xbf16>
    %c0_85 = arith.constant 0 : index
    %c0_86 = arith.constant 0 : index
    %65 = vector.load %arg6[%c0_85, %c0_86] : memref<256x128xf32, #tpu.memory_space<vmem>>, vector<256x128xf32>
    %66 = arith.truncf %62 : vector<256x4xf32> to vector<256x4xbf16>
    %cst_87 = arith.constant dense<0.000000e+00> : vector<256x128xf32>
    %67 = tpu.matmul %66, %64, %cst_87 {dimension_numbers = #tpu.dot_dimension_numbers<[1], [0], [0], [1], [0, 0, 1, 1], [], []>} : vector<256x4xbf16>, vector<4x128xbf16>, vector<256x128xf32> -> vector<256x128xf32>
    %68 = arith.addf %65, %67 : vector<256x128xf32>
    %c0_88 = arith.constant 0 : index
    %c0_89 = arith.constant 0 : index
    %69 = vector.load %arg6[%c0_88, %c0_89] : memref<256x128xf32, #tpu.memory_space<vmem>>, vector<256x128xf32>
    tpu.vector_store %arg6[%c0_88, %c0_89], %68 {strides = array<i32>} : memref<256x128xf32, #tpu.memory_space<vmem>>, vector<256x128xf32>,
    %c0_90 = arith.constant 0 : index
    %c2_91 = arith.constant 2 : index
    %c0_92 = arith.constant 0 : index
    %c0_93 = arith.constant 0 : index
    %70 = vector.load %arg5[%c0_90, %c2_91, %c0_92, %c0_93] : memref<1x18x18x4xf32, #tpu.memory_space<vmem>>, vector<1x16x16x4xf32>
    %71 = vector.shape_cast %70 : vector<1x16x16x4xf32> to vector<16x16x4xf32>
    %72 = vector.shape_cast %71 : vector<16x16x4xf32> to vector<256x4xf32>
    %c2_94 = arith.constant 2 : index
    %c0_95 = arith.constant 0 : index
    %c0_96 = arith.constant 0 : index
    %c0_97 = arith.constant 0 : index
    %73 = vector.load %arg2[%c2_94, %c0_95, %c0_96, %c0_97] : memref<3x3x4x128xbf16, #tpu.memory_space<vmem>>, vector<1x1x4x128xbf16>
    %74 = vector.shape_cast %73 : vector<1x1x4x128xbf16> to vector<4x128xbf16>
    %c0_98 = arith.constant 0 : index
    %c0_99 = arith.constant 0 : index
    %75 = vector.load %arg6[%c0_98, %c0_99] : memref<256x128xf32, #tpu.memory_space<vmem>>, vector<256x128xf32>
    %76 = arith.truncf %72 : vector<256x4xf32> to vector<256x4xbf16>
    %cst_100 = arith.constant dense<0.000000e+00> : vector<256x128xf32>
    %77 = tpu.matmul %76, %74, %cst_100 {dimension_numbers = #tpu.dot_dimension_numbers<[1], [0], [0], [1], [0, 0, 1, 1], [], []>} : vector<256x4xbf16>, vector<4x128xbf16>, vector<256x128xf32> -> vector<256x128xf32>
    %78 = arith.addf %75, %77 : vector<256x128xf32>
    %c0_101 = arith.constant 0 : index
    %c0_102 = arith.constant 0 : index
    %79 = vector.load %arg6[%c0_101, %c0_102] : memref<256x128xf32, #tpu.memory_space<vmem>>, vector<256x128xf32>
    tpu.vector_store %arg6[%c0_101, %c0_102], %78 {strides = array<i32>} : memref<256x128xf32, #tpu.memory_space<vmem>>, vector<256x128xf32>,
    %c0_103 = arith.constant 0 : index
    %c2_104 = arith.constant 2 : index
    %c1_105 = arith.constant 1 : index
    %c0_106 = arith.constant 0 : index
    %80 = vector.load %arg5[%c0_103, %c2_104, %c1_105, %c0_106] : memref<1x18x18x4xf32, #tpu.memory_space<vmem>>, vector<1x16x16x4xf32>
    %81 = vector.shape_cast %80 : vector<1x16x16x4xf32> to vector<16x16x4xf32>
    %82 = vector.shape_cast %81 : vector<16x16x4xf32> to vector<256x4xf32>
    %c2_107 = arith.constant 2 : index
    %c1_108 = arith.constant 1 : index
    %c0_109 = arith.constant 0 : index
    %c0_110 = arith.constant 0 : index
    %83 = vector.load %arg2[%c2_107, %c1_108, %c0_109, %c0_110] : memref<3x3x4x128xbf16, #tpu.memory_space<vmem>>, vector<1x1x4x128xbf16>
    %84 = vector.shape_cast %83 : vector<1x1x4x128xbf16> to vector<4x128xbf16>
    %c0_111 = arith.constant 0 : index
    %c0_112 = arith.constant 0 : index
    %85 = vector.load %arg6[%c0_111, %c0_112] : memref<256x128xf32, #tpu.memory_space<vmem>>, vector<256x128xf32>
    %86 = arith.truncf %82 : vector<256x4xf32> to vector<256x4xbf16>
    %cst_113 = arith.constant dense<0.000000e+00> : vector<256x128xf32>
    %87 = tpu.matmul %86, %84, %cst_113 {dimension_numbers = #tpu.dot_dimension_numbers<[1], [0], [0], [1], [0, 0, 1, 1], [], []>} : vector<256x4xbf16>, vector<4x128xbf16>, vector<256x128xf32> -> vector<256x128xf32>
    %88 = arith.addf %85, %87 : vector<256x128xf32>
    %c0_114 = arith.constant 0 : index
    %c0_115 = arith.constant 0 : index
    %89 = vector.load %arg6[%c0_114, %c0_115] : memref<256x128xf32, #tpu.memory_space<vmem>>, vector<256x128xf32>
    tpu.vector_store %arg6[%c0_114, %c0_115], %88 {strides = array<i32>} : memref<256x128xf32, #tpu.memory_space<vmem>>, vector<256x128xf32>,
    %c0_116 = arith.constant 0 : index
    %c2_117 = arith.constant 2 : index
    %c2_118 = arith.constant 2 : index
    %c0_119 = arith.constant 0 : index
    %90 = vector.load %arg5[%c0_116, %c2_117, %c2_118, %c0_119] : memref<1x18x18x4xf32, #tpu.memory_space<vmem>>, vector<1x16x16x4xf32>
    %91 = vector.shape_cast %90 : vector<1x16x16x4xf32> to vector<16x16x4xf32>
    %92 = vector.shape_cast %91 : vector<16x16x4xf32> to vector<256x4xf32>
    %c2_120 = arith.constant 2 : index
    %c2_121 = arith.constant 2 : index
    %c0_122 = arith.constant 0 : index
    %c0_123 = arith.constant 0 : index
    %93 = vector.load %arg2[%c2_120, %c2_121, %c0_122, %c0_123] : memref<3x3x4x128xbf16, #tpu.memory_space<vmem>>, vector<1x1x4x128xbf16>
    %94 = vector.shape_cast %93 : vector<1x1x4x128xbf16> to vector<4x128xbf16>
    %c0_124 = arith.constant 0 : index
    %c0_125 = arith.constant 0 : index
    %95 = vector.load %arg6[%c0_124, %c0_125] : memref<256x128xf32, #tpu.memory_space<vmem>>, vector<256x128xf32>
    %96 = arith.truncf %92 : vector<256x4xf32> to vector<256x4xbf16>
    %cst_126 = arith.constant dense<0.000000e+00> : vector<256x128xf32>
    %97 = tpu.matmul %96, %94, %cst_126 {dimension_numbers = #tpu.dot_dimension_numbers<[1], [0], [0], [1], [0, 0, 1, 1], [], []>} : vector<256x4xbf16>, vector<4x128xbf16>, vector<256x128xf32> -> vector<256x128xf32>
    %98 = arith.addf %95, %97 : vector<256x128xf32>
    %c0_127 = arith.constant 0 : index
    %c0_128 = arith.constant 0 : index
    %99 = vector.load %arg6[%c0_127, %c0_128] : memref<256x128xf32, #tpu.memory_space<vmem>>, vector<256x128xf32>
    tpu.vector_store %arg6[%c0_127, %c0_128], %98 {strides = array<i32>} : memref<256x128xf32, #tpu.memory_space<vmem>>, vector<256x128xf32>,
    %c0_129 = arith.constant 0 : index
    %c0_130 = arith.constant 0 : index
    %100 = vector.load %arg6[%c0_129, %c0_130] : memref<256x128xf32, #tpu.memory_space<vmem>>, vector<256x128xf32>
    %c0_131 = arith.constant 0 : index
    %c0_132 = arith.constant 0 : index
    %101 = vector.load %arg3[%c0_131, %c0_132] : memref<1x128xf32, #tpu.memory_space<vmem>>, vector<1x128xf32>
    %102 = vector.broadcast %101 : vector<1x128xf32> to vector<256x128xf32>
    %103 = arith.addf %100, %102 : vector<256x128xf32>
    %cst_133 = arith.constant 0.000000e+00 : f32
    %104 = vector.broadcast %cst_133 : f32 to vector<256x128xf32>
    %105 = arith.maximumf %103, %104 : vector<256x128xf32>
    %106 = vector.shape_cast %105 : vector<256x128xf32> to vector<1x16x16x128xf32>
    %107 = arith.truncf %106 : vector<1x16x16x128xf32> to vector<1x16x16x128xbf16>
    %c0_134 = arith.constant 0 : index
    %c0_135 = arith.constant 0 : index
    %c0_136 = arith.constant 0 : index
    %c0_137 = arith.constant 0 : index
    %108 = vector.load %arg4[%c0_134, %c0_135, %c0_136, %c0_137] : memref<1x16x16x128xbf16, #tpu.memory_space<vmem>>, vector<1x16x16x128xbf16>
    tpu.vector_store %arg4[%c0_134, %c0_135, %c0_136, %c0_137], %107 {strides = array<i32>} : memref<1x16x16x128xbf16, #tpu.memory_space<vmem>>, vector<1x16x16x128xbf16>,
    return
  }
  func.func @transform_0(%arg0: i32) -> (i32, i32, i32, i32) {
    %c0_i32 = arith.constant 0 : i32
    %c0_i32_0 = arith.constant 0 : i32
    %c0_i32_1 = arith.constant 0 : i32
    %c0_i32_2 = arith.constant 0 : i32
    return %arg0, %c0_i32, %c0_i32_0, %c0_i32_1 : i32, i32, i32, i32
  }
  func.func @transform_1(%arg0: i32) -> (i32, i32, i32, i32) {
    %c0_i32 = arith.constant 0 : i32
    %c0_i32_0 = arith.constant 0 : i32
    %c0_i32_1 = arith.constant 0 : i32
    %c0_i32_2 = arith.constant 0 : i32
    %c0_i32_3 = arith.constant 0 : i32
    return %c0_i32, %c0_i32_0, %c0_i32_1, %c0_i32_2 : i32, i32, i32, i32
  }
  func.func @transform_2(%arg0: i32) -> (i32, i32) {
    %c0_i32 = arith.constant 0 : i32
    %c0_i32_0 = arith.constant 0 : i32
    %c0_i32_1 = arith.constant 0 : i32
    return %c0_i32, %c0_i32_0 : i32, i32
  }
  func.func @transform_3(%arg0: i32) -> (i32, i32, i32, i32) {
    %c0_i32 = arith.constant 0 : i32
    %c0_i32_0 = arith.constant 0 : i32
    %c0_i32_1 = arith.constant 0 : i32
    %c0_i32_2 = arith.constant 0 : i32
    return %arg0, %c0_i32, %c0_i32_0, %c0_i32_1 : i32, i32, i32, i32
  }
}

</mosaic_0001>

<bundles_post_ra>
// kernel: tpu_custom_call.1
= control target key start
LH: loop header
LB: loop body
LE: loop exit
PB: predicated region body
PF: predicated region fallthrough
CT: control target
= control target key end

     0   :  { %8 = vsyncpa [#allocation5], 0  ;;  %s4525_s0 = inlined_call_operand.vmem [shape: bf16[2,16,16,4], index: 0, kind: input, shape index: {}]   ;;  %s4526_s1 = inlined_call_operand.vmem [shape: bf16[3,3,4,128], index: 1, kind: input, shape index: {}]   ;;  %s4527_s2 = inlined_call_operand.vmem [shape: f32[1,128], index: 2, kind: input, shape index: {}]   ;;  %s4528_s3 = inlined_call_operand.hbm [shape: bf16[2,16,16,128], index: 3, kind: output, shape index: {}]  }
   0x1   :  { %10 = vsyncpa [#allocation5 + $0x1], 0  ;;  %s3645_s12 = smov 0   ;;  %s3647_s13 = smov 0  }
   0x2   :  { %s3649_s14 = smov 0   ;;  %s3651_s15 = smov 0  }
   0x3 LB: > { %s3666_s16 = sadd.s32 4294967295, %s3620_s15   ;;  %s3172_s17 = sadd.s32 4294967294, %s3620_s15   ;;  %s3620_s15 = sphi %s3651_s15, %s4582_s15   ;;  %s3616_s14 = sphi %s3649_s14, %s4581_s14   ;;  %s3612_s13 = sphi %s3647_s13, %s4580_s13   ;;  %s3608_s12 = sphi %s3645_s12, %s4579_s12  }
   0x4   : > { %s3670_s18 = sadd.s32 1, %s3620_s15   ;;  %s91_s19 = sadd.s32 1, %s3616_s14 }
   0x5   : > { %s88_s20 = ssub.s32 %s3620_s15, %s3670_s18  ;;  %p101_p0 = scmp.ne.s32.totalorder %s3616_s14, %s3612_s13 }
   0x6   : > { %p89_p1 = scmp.eq.s32.totalorder %s88_s20, 0  ;;  %p102_p2 = scmp.eq.s32.totalorder %s3666_s16, 1 }
   0x7   : > { %p107_p3 = scmp.ne.s32.totalorder %s3612_s13, %s3608_s12  ;;  %p108_p4 = scmp.eq.s32.totalorder %s3172_s17, 1 }
   0x8   : > { %s3681_s21 = scalar_select %p89_p1, %s3616_s14, %s91_s19  }
   0x9   : > { %p3683_p5 = por %p102_p2, %p101_p0  ;;  %p3687_p6 = por %p108_p4, %p107_p3 }
   0xa   : > { %p3175_p7 = scmp.ge.s32.totalorder %s3620_s15, 1  ;;  %p140_p8 = scmp.lt.s32.totalorder %s3620_s15, 3 }
   0xc   : > { %p141_p9 = pnand %p3175_p7, %p140_p8 }
   0xe   : > { %144 = sbr.rel (%p141_p9) target bundleno = 804 (0x324), region = 32 }
  0x13   : > { %v387_v0 = vld [vmem:[%s4526_s1] sm:$0x3]  ;;  %vm484_vm0 = vcmask 1041408   ;;  %p164_p10 = scmp.lt.s32.totalorder %s3666_s16, 1  ;;  %vm170_vm1 = vcmask 31744   ;;  %vm173_vm2 = vcmask 25600  }
  0x14   : > { %v486_v1 = vsel %vm484_vm0, %v387_v0, 0  ;;  %v3622_v2 = vmov 0.0   ;;  %v3212_v11 = vld [vmem:[%s4526_s1 + $0x4] sm:$0x3]  ;;  %v3229_v13 = vld [vmem:[%s4526_s1 + $0x6] sm:$0x3] }
  0x15   : > { %184 = vst.msk [vmem:[#allocation2 + $0x60] sm:$0xff] %vm170_vm1, %v3622_v2  ;;  %3512 = vmatpush.bf16.msra.mxu1 %v486_v1  ;;  %3513 = vmatpush.bf16.msra.mxu2 %v486_v1  ;;  %s165_s26 = scalar_select %p164_p10, %s3666_s16, 1  ;;  %v1058_v14 = vsel %vm484_vm0, %v3212_v11, 0  ;;  %v1344_v15 = vsel %vm484_vm0, %v3229_v13, 0  ;;  %v3195_v16 = vld [vmem:[%s4526_s1 + $0x2] sm:$0x3] }
  0x16   : > { %185 = vst.msk [vmem:[#allocation2 + $0x68] sm:$0xff] %vm170_vm1, %v3622_v2  ;;  %3514 = vmatpush.bf16.msra.mxu3 %v486_v1  ;;  %495 = vmatpush.bf16.msra.mxu0 %v486_v1  ;;  %v772_v17 = vsel %vm484_vm0, %v3195_v16, 0  ;;  %v3246_v18 = vld [vmem:[%s4526_s1 + $0x8] sm:$0x3]  ;;  %s161_s4 = sand.u32 1, %s3612_s13   ;;  %s3337_s7 = sshll.u32 %s3666_s16, 7 }
  0x17   : > { %186 = vst.msk [vmem:[#allocation2 + $0x70] sm:$0x3] %vm173_vm2, %v3622_v2  ;;  %s3336_s27 = sshll.u32 %s165_s26, 7  ;;  %v1630_v19 = vsel %vm484_vm0, %v3246_v18, 0  ;;  %s3176_s5 = sshll.u32 %s161_s4, 7 }
  0x18   : > { %171 = vst.msk [vmem:[#allocation2] sm:$0xff] %vm170_vm1, %v3622_v2  ;;  %s3710_s30 = scalar_lea.vmem %s4525_s0, %s3336_s27  ;;  %s4380_s6 = scalar_lea.vmem [#allocation4], %s3176_s5 }
  0x19   : > { %172 = vst.msk [vmem:[#allocation2 + $0x8] sm:$0xff] %vm170_vm1, %v3622_v2  ;;  %v3484_v3 = vld [vmem:[%s3710_s30 + $0x18] sm:$0xff]   ;;  %1067 = vmatpush.bf16.msrb.mxu2 %v1058_v14  ;;  %781 = vmatpush.bf16.msrb.mxu1 %v772_v17  ;;  %v3485_v24 = vld [vmem:[%s3710_s30 + $0x20] sm:$0xff]   ;;  %v3486_v36 = vld [vmem:[%s3710_s30 + $0x28] sm:$0xff]   ;;  %s3106_s10 = scalar_lea.hbm %s4528_s3, %s3337_s7  ;;  %s3107_s11 = sshll.u32 %s4380_s6, 4  ;;  %s3108_s11 = int_to_ptr.vmem [resolvable:$true] %s3107_s11 }
  0x1a   : > { %174 = vst.msk [vmem:[#allocation2 + $0x10] sm:$0x3] %vm173_vm2, %v3622_v2  ;;  %v3352_v4 = vunpack.c.l.bf16 %v3484_v3  ;;  %v3353_v5 = vunpack.c.h.bf16 %v3484_v3  ;;  %1353 = vmatpush.bf16.msrb.mxu3 %v1344_v15  ;;  %1639 = vmatpush.bf16.msrb.mxu0 %v1630_v19  ;;  %v3488_v20 = vld [vmem:[%s3710_s30 + $0x38] sm:$0xff]   ;;  %v3489_v27 = vld [vmem:[%s3710_s30 + $0x40] sm:$0xff]   ;;  %v3356_v28 = vunpack.c.l.bf16 %v3485_v24  ;;  %v3357_v29 = vunpack.c.h.bf16 %v3485_v24  ;;  %v3490_v40 = vld [vmem:[%s3710_s30 + $0x48] sm:$0xff]   ;;  %s3109_s17 = sshll.u32 %s3106_s10, 4  ;;  %s3110_s17 = int_to_ptr.hbm [resolvable:$true] %s3109_s17 }
  0x1b   : > { %175 = vst.msk [vmem:[#allocation2 + $0x18] sm:$0xff] %vm170_vm1, %v3622_v2  ;;  %v3492_v21 = vld [vmem:[%s3710_s30 + $0x58] sm:$0xff]   ;;  %v3368_v22 = vunpack.c.l.bf16 %v3488_v20  ;;  %v3369_v23 = vunpack.c.h.bf16 %v3488_v20  ;;  %v3493_v30 = vld [vmem:[%s3710_s30 + $0x60] sm:$0xff]   ;;  %v3372_v31 = vunpack.c.l.bf16 %v3489_v27  ;;  %v3373_v32 = vunpack.c.h.bf16 %v3489_v27  ;;  %v3494_v46 = vld [vmem:[%s3710_s30 + $0x68] sm:$0xff]   ;;  %s3095_s16 = scalar_lea.sflag [#allocation5], %s161_s4  ;;  %s3572_s19 = sshra.s32 %s3110_s17, 4  ;;  %s3573_s19 = int_to_ptr.hbm [resolvable:$true] %s3572_s19 }
  0x1c   : > { %176 = vst.msk [vmem:[#allocation2 + $0x20] sm:$0xff] %vm170_vm1, %v3622_v2  ;;  %v3384_v25 = vunpack.c.l.bf16 %v3492_v21  ;;  %v3385_v26 = vunpack.c.h.bf16 %v3492_v21  ;;  %v3339_v33 = vld [vmem:[%s3710_s30] sm:$0xff]   ;;  %v3388_v34 = vunpack.c.l.bf16 %v3493_v30  ;;  %v3389_v35 = vunpack.c.h.bf16 %v3493_v30  ;;  %v3482_v52 = vld [vmem:[%s3710_s30 + $0x8] sm:$0xff]   ;;  %v3487_v57 = vld [vmem:[%s3710_s30 + $0x30] sm:$0xff]   ;;  %s3574_s20 = scalar_lea.hbm %s3573_s19, 128  ;;  %s3578_s26 = scalar_lea.hbm %s4528_s3, 256 }
  0x1d   : > { %297 = vst.msk [vmem:[#allocation2 + $0x61] sm:$0xff] %vm170_vm1, %v3352_v4  ;;  %v3340_v37 = vunpack.c.l.bf16 %v3339_v33  ;;  %v3341_v39 = vunpack.c.h.bf16 %v3339_v33  ;;  %v3360_v42 = vunpack.c.l.bf16 %v3486_v36  ;;  %v3361_v45 = vunpack.c.h.bf16 %v3486_v36  ;;  %v3491_v60 = vld [vmem:[%s3710_s30 + $0x50] sm:$0xff]   ;;  %v3280_v33 = vld [vmem:[%s4526_s1 + $0xc] sm:$0x3]  ;;  %p3575_p11 = scmp.ne.s32.totalorder %s3573_s19, %s3574_s20  ;;  %p3579_p0 = scmp.lt.s32.totalorder %s3573_s19, %s4528_s3 }
  0x1e   : > { %298 = vst.msk [vmem:[#allocation2 + $0x69] sm:$0xff] %vm170_vm1, %v3353_v5  ;;  %v3376_v48 = vunpack.c.l.bf16 %v3490_v40  ;;  %v3377_v51 = vunpack.c.h.bf16 %v3490_v40  ;;  %v3392_v54 = vunpack.c.l.bf16 %v3494_v46  ;;  %v3393_v56 = vunpack.c.h.bf16 %v3494_v46  ;;  %v3495_v0 = vld [vmem:[%s3710_s30 + $0x70] sm:$0xff]   ;;  %p3580_p1 = scmp.lt.s32.totalorder %s3578_s26, %s3574_s20 }
  0x1f   : > { %177 = vst.msk [vmem:[#allocation2 + $0x28] sm:$0x3] %vm173_vm2, %v3622_v2  ;;  %v355_v9 = vld [vmem:[#allocation2] sm:$0xff]  ;;  %v3344_v58 = vunpack.c.l.bf16 %v3482_v52  ;;  %v3345_v59 = vunpack.c.h.bf16 %v3482_v52  ;;  %v3364_v61 = vunpack.c.l.bf16 %v3487_v57  ;;  %v3365_v63 = vunpack.c.h.bf16 %v3487_v57  ;;  %v3483_v5 = vld [vmem:[%s3710_s30 + $0x10] sm:$0xff]   ;;  %p3576_p12 = pnand %p3575_p11, %p3683_p5 }
  0x20   : > { %178 = vst.msk [vmem:[#allocation2 + $0x30] sm:$0xff] %vm170_vm1, %v3622_v2  ;;  %v356_v10 = vld [vmem:[#allocation2 + $0x8] sm:$0xff]  ;;  %v3381_v4 = vunpack.c.h.bf16 %v3491_v60  ;;  %v3348_v13 = vunpack.c.l.bf16 %v3483_v5  ;;  %v3349_v15 = vunpack.c.h.bf16 %v3483_v5  ;;  %v3314_v40 = vld [vmem:[%s4526_s1 + $0x10] sm:$0x3]  ;;  %p3581_p2 = por %p3580_p1, %p3579_p0 }
  0x21   : > { %179 = vst.msk [vmem:[#allocation2 + $0x38] sm:$0xff] %vm170_vm1, %v3622_v2  ;;  %v420_v12 = vpack.c.bf16 %v356_v10, %v355_v9  ;;  %v3396_v9 = vunpack.c.l.bf16 %v3495_v0  ;;  %v3397_v10 = vunpack.c.h.bf16 %v3495_v0  ;;  %p3577_p13 = pneg %p3576_p12 }
  0x22   : > { %180 = vst.msk [vmem:[#allocation2 + $0x40] sm:$0x3] %vm173_vm2, %v3622_v2 }
  0x23   : > { %181 = vst.msk [vmem:[#allocation2 + $0x48] sm:$0xff] %vm170_vm1, %v3622_v2  ;;  %3179 = vmatmul.msk.bf16.vlgmr.msra.gmra.mxu0 %vm170_vm1, %v420_v12  ;;  %p3582_p3 = pnand %p3581_p2, %p3577_p13 }
  0x24   : > { %v363_v6 = vld [vmem:[#allocation2 + $0x60] sm:$0xff]  ;;  %182 = vst.msk [vmem:[#allocation2 + $0x50] sm:$0xff] %vm170_vm1, %v3622_v2 }
  0x25   : > { %v364_v7 = vld [vmem:[#allocation2 + $0x68] sm:$0xff]  ;;  %183 = vst.msk [vmem:[#allocation2 + $0x58] sm:$0x3] %vm173_vm2, %v3622_v2 }
  0x26   : > { %v3737_v8 = vpack.c.bf16 %v364_v7, %v363_v6  ;;  %187 = vst.msk [vmem:[#allocation2 + $0x78] sm:$0xff] %vm170_vm1, %v3622_v2 }
  0x27   : > { %188 = vst.msk [vmem:[#allocation2 + $0x80] sm:$0xff] %vm170_vm1, %v3622_v2 }
  0x28   : > { %3183 = vmatmul.msk.bf16.vlgmr.msra.gmra.mxu1 %vm170_vm1, %v3737_v8  ;;  %189 = vst.msk [vmem:[#allocation2 + $0x88] sm:$0x3] %vm173_vm2, %v3622_v2 }
  0x29   : > { %190 = vst.msk [vmem:[#allocation2 + $0x90] sm:$0xff] %vm170_vm1, %v3622_v2 }
  0x2a   : > { %191 = vst.msk [vmem:[#allocation2 + $0x98] sm:$0xff] %vm170_vm1, %v3622_v2 }
  0x2b   : > { %192 = vst.msk [vmem:[#allocation2 + $0xa0] sm:$0x3] %vm173_vm2, %v3622_v2 }
  0x2c   : > { %193 = vst.msk [vmem:[#allocation2 + $0xa8] sm:$0xff] %vm170_vm1, %v3622_v2 }
  0x2d   : > { %194 = vst.msk [vmem:[#allocation2 + $0xb0] sm:$0xff] %vm170_vm1, %v3622_v2 }
  0x2e   : > { %195 = vst.msk [vmem:[#allocation2 + $0xb8] sm:$0x3] %vm173_vm2, %v3622_v2 }
  0x2f   : > { %196 = vst.msk [vmem:[#allocation2 + $0xc0] sm:$0xff] %vm170_vm1, %v3622_v2 }
  0x30   : > { %197 = vst.msk [vmem:[#allocation2 + $0xc8] sm:$0xff] %vm170_vm1, %v3622_v2 }
  0x31   : > { %198 = vst.msk [vmem:[#allocation2 + $0xd0] sm:$0x3] %vm173_vm2, %v3622_v2 }
  0x32   : > { %199 = vst.msk [vmem:[#allocation2 + $0xd8] sm:$0xff] %vm170_vm1, %v3622_v2 }
  0x33   : > { %200 = vst.msk [vmem:[#allocation2 + $0xe0] sm:$0xff] %vm170_vm1, %v3622_v2 }
  0x34   : > { %201 = vst.msk [vmem:[#allocation2 + $0xe8] sm:$0x3] %vm173_vm2, %v3622_v2 }
  0x35   : > { %202 = vst.msk [vmem:[#allocation2 + $0xf0] sm:$0xff] %vm170_vm1, %v3622_v2 }
  0x36   : > { %203 = vst.msk [vmem:[#allocation2 + $0xf8] sm:$0xff] %vm170_vm1, %v3622_v2 }
  0x37   : > { %204 = vst.msk [vmem:[#allocation2 + $0x100] sm:$0x3] %vm173_vm2, %v3622_v2 }
  0x38   : > { %205 = vst.msk [vmem:[#allocation2 + $0x108] sm:$0xff] %vm170_vm1, %v3622_v2 }
  0x39   : > { %206 = vst.msk [vmem:[#allocation2 + $0x110] sm:$0xff] %vm170_vm1, %v3622_v2 }
  0x3a   : > { %207 = vst.msk [vmem:[#allocation2 + $0x118] sm:$0x3] %vm173_vm2, %v3622_v2 }
  0x3b   : > { %208 = vst.msk [vmem:[#allocation2 + $0x120] sm:$0xff] %vm170_vm1, %v3622_v2 }
  0x3c   : > { %209 = vst.msk [vmem:[#allocation2 + $0x128] sm:$0xff] %vm170_vm1, %v3622_v2 }
  0x3d   : > { %210 = vst.msk [vmem:[#allocation2 + $0x130] sm:$0x3] %vm173_vm2, %v3622_v2 }
  0x3e   : > { %211 = vst.msk [vmem:[#allocation2 + $0x138] sm:$0xff] %vm170_vm1, %v3622_v2 }
  0x3f   : > { %212 = vst.msk [vmem:[#allocation2 + $0x140] sm:$0xff] %vm170_vm1, %v3622_v2 }
  0x40   : > { %213 = vst.msk [vmem:[#allocation2 + $0x148] sm:$0x3] %vm173_vm2, %v3622_v2 }
  0x41   : > { %214 = vst.msk [vmem:[#allocation2 + $0x150] sm:$0xff] %vm170_vm1, %v3622_v2 }
  0x42   : > { %215 = vst.msk [vmem:[#allocation2 + $0x158] sm:$0xff] %vm170_vm1, %v3622_v2 }
  0x43   : > { %216 = vst.msk [vmem:[#allocation2 + $0x160] sm:$0x3] %vm173_vm2, %v3622_v2 }
  0x44   : > { %217 = vst.msk [vmem:[#allocation2 + $0x168] sm:$0xff] %vm170_vm1, %v3622_v2 }
  0x45   : > { %218 = vst.msk [vmem:[#allocation2 + $0x170] sm:$0xff] %vm170_vm1, %v3622_v2 }
  0x46   : > { %219 = vst.msk [vmem:[#allocation2 + $0x178] sm:$0x3] %vm173_vm2, %v3622_v2 }
  0x47   : > { %220 = vst.msk [vmem:[#allocation2 + $0x180] sm:$0xff] %vm170_vm1, %v3622_v2 }
  0x48   : > { %221 = vst.msk [vmem:[#allocation2 + $0x188] sm:$0xff] %vm170_vm1, %v3622_v2 }
  0x49   : > { %222 = vst.msk [vmem:[#allocation2 + $0x190] sm:$0x3] %vm173_vm2, %v3622_v2 }
  0x4a   : > { %223 = vst.msk [vmem:[#allocation2 + $0x198] sm:$0xff] %vm170_vm1, %v3622_v2 }
  0x4b   : > { %224 = vst.msk [vmem:[#allocation2 + $0x1a0] sm:$0xff] %vm170_vm1, %v3622_v2 }
  0x4c   : > { %225 = vst.msk [vmem:[#allocation2 + $0x1a8] sm:$0x3] %vm173_vm2, %v3622_v2  ;;  %v3380_v2 = vunpack.c.l.bf16 %v3491_v60 }
  0x4d   : > { %305 = vst.msk [vmem:[#allocation2 + $0xc1] sm:$0xff] %vm170_vm1, %v3368_v22 }
  0x4e   : > { %306 = vst.msk [vmem:[#allocation2 + $0xc9] sm:$0xff] %vm170_vm1, %v3369_v23 }
  0x4f   : > { %313 = vst.msk [vmem:[#allocation2 + $0x121] sm:$0xff] %vm170_vm1, %v3384_v25 }
  0x50   : > { %314 = vst.msk [vmem:[#allocation2 + $0x129] sm:$0xff] %vm170_vm1, %v3385_v26 }
  0x51   : > { %299 = vst.msk [vmem:[#allocation2 + $0x79] sm:$0xff] %vm170_vm1, %v3356_v28 }
  0x52   : > { %300 = vst.msk [vmem:[#allocation2 + $0x81] sm:$0xff] %vm170_vm1, %v3357_v29 }
  0x53   : > { %307 = vst.msk [vmem:[#allocation2 + $0xd9] sm:$0xff] %vm170_vm1, %v3372_v31 }
  0x54   : > { %v371_v38 = vld [vmem:[#allocation2 + $0xc0] sm:$0xff]  ;;  %308 = vst.msk [vmem:[#allocation2 + $0xe1] sm:$0xff] %vm170_vm1, %v3373_v32 }
  0x55   : > { %v372_v41 = vld [vmem:[#allocation2 + $0xc8] sm:$0xff]  ;;  %315 = vst.msk [vmem:[#allocation2 + $0x139] sm:$0xff] %vm170_vm1, %v3388_v34 }
  0x56   : > { %v3853_v43 = vpack.c.bf16 %v372_v41, %v371_v38  ;;  %v379_v44 = vld [vmem:[#allocation2 + $0x120] sm:$0xff]  ;;  %316 = vst.msk [vmem:[#allocation2 + $0x141] sm:$0xff] %vm170_vm1, %v3389_v35  ;;  %v3297_v34 = vld [vmem:[%s4526_s1 + $0xe] sm:$0x3]  ;;  %v3263_v35 = vld [vmem:[%s4526_s1 + $0xa] sm:$0x3] }
  0x57   : > { %v380_v47 = vld [vmem:[#allocation2 + $0x128] sm:$0xff]  ;;  %291 = vst.msk [vmem:[#allocation2 + $0x19] sm:$0xff] %vm170_vm1, %v3340_v37  ;;  %v2203_v37 = vsel %vm484_vm0, %v3280_v33, 0  ;;  %v2489_v38 = vsel %vm484_vm0, %v3297_v34, 0  ;;  %v2775_v41 = vsel %vm484_vm0, %v3314_v40, 0 }
  0x58   : > { %3187 = vmatmul.msk.bf16.vlgmr.msra.gmra.mxu2 %vm170_vm1, %v3853_v43  ;;  %v3860_v49 = vpack.c.bf16 %v380_v47, %v379_v44  ;;  %v365_v50 = vld [vmem:[#allocation2 + $0x78] sm:$0xff]  ;;  %292 = vst.msk [vmem:[#allocation2 + $0x21] sm:$0xff] %vm170_vm1, %v3341_v39  ;;  %v1916_v39 = vsel %vm484_vm0, %v3263_v35, 0  ;;  %2784 = vmatpush.bf16.msra.mxu0 %v2775_v41 }
  0x59   : > { %v366_v53 = vld [vmem:[#allocation2 + $0x80] sm:$0xff]  ;;  %301 = vst.msk [vmem:[#allocation2 + $0x91] sm:$0xff] %vm170_vm1, %v3360_v42  ;;  %2212 = vmatpush.bf16.msra.mxu2 %v2203_v37  ;;  %1925 = vmatpush.bf16.msra.mxu1 %v1916_v39 }
  0x5a   : > { %3191 = vmatmul.msk.bf16.vlgmr.msra.gmra.mxu3 %vm170_vm1, %v3860_v49  ;;  %v3867_v55 = vpack.c.bf16 %v366_v53, %v365_v50  ;;  %302 = vst.msk [vmem:[#allocation2 + $0x99] sm:$0xff] %vm170_vm1, %v3361_v45  ;;  %v373_v6 = vld [vmem:[#allocation2 + $0xd8] sm:$0xff]  ;;  %v641_v50 = vld [vmem:[#allocation2 + $0x1] sm:$0xff] }
  0x5b   : > { %309 = vst.msk [vmem:[#allocation2 + $0xf1] sm:$0xff] %vm170_vm1, %v3376_v48  ;;  %v374_v7 = vld [vmem:[#allocation2 + $0xe0] sm:$0xff]  ;;  %2498 = vmatpush.bf16.msra.mxu3 %v2489_v38 }
  0x5c   : > { %3184 = vmatmul.msk.bf16.gmra.mxu1 %vm170_vm1, %v3867_v55  ;;  %310 = vst.msk [vmem:[#allocation2 + $0xf9] sm:$0xff] %vm170_vm1, %v3377_v51  ;;  %v381_v11 = vld [vmem:[#allocation2 + $0x138] sm:$0xff]  ;;  %v3889_v14 = vpack.c.bf16 %v374_v7, %v373_v6  ;;  %v642_v51 = vld [vmem:[#allocation2 + $0x9] sm:$0xff] }
  0x5d   : > { %317 = vst.msk [vmem:[#allocation2 + $0x151] sm:$0xff] %vm170_vm1, %v3392_v54  ;;  %v382_v12 = vld [vmem:[#allocation2 + $0x140] sm:$0xff]  ;;  %v707_v53 = vpack.c.bf16 %v642_v51, %v641_v50 }
  0x5e   : > { %v357_v62 = vld [vmem:[#allocation2 + $0x18] sm:$0xff]  ;;  %318 = vst.msk [vmem:[#allocation2 + $0x159] sm:$0xff] %vm170_vm1, %v3393_v56  ;;  %v3893_v18 = vpack.c.bf16 %v382_v12, %v381_v11  ;;  %v1506_v11 = vld [vmem:[#allocation2 + $0x69] sm:$0xff] }
  0x5f   : > { %v358_v1 = vld [vmem:[#allocation2 + $0x20] sm:$0xff]  ;;  %293 = vst.msk [vmem:[#allocation2 + $0x31] sm:$0xff] %vm170_vm1, %v3344_v58 }
  0x60   : > { %v3880_v3 = vpack.c.bf16 %v358_v1, %v357_v62  ;;  %294 = vst.msk [vmem:[#allocation2 + $0x39] sm:$0xff] %vm170_vm1, %v3345_v59  ;;  %v367_v16 = vld [vmem:[#allocation2 + $0x90] sm:$0xff]  ;;  %v1499_v54 = vld [vmem:[#allocation2 + $0x19] sm:$0xff]  ;;  %v1500_v56 = vld [vmem:[#allocation2 + $0x21] sm:$0xff] }
  0x61   : > { %303 = vst.msk [vmem:[#allocation2 + $0xa9] sm:$0xff] %vm170_vm1, %v3364_v61  ;;  %v368_v17 = vld [vmem:[#allocation2 + $0x98] sm:$0xff]  ;;  %v1565_v57 = vpack.c.bf16 %v1500_v56, %v1499_v54  ;;  %v927_v58 = vld [vmem:[#allocation2 + $0x2] sm:$0xff]  ;;  %v928_v59 = vld [vmem:[#allocation2 + $0xa] sm:$0xff] }
  0x62   : > { %3180 = vmatmul.msk.bf16.gmra.mxu0 %vm170_vm1, %v3880_v3  ;;  %304 = vst.msk [vmem:[#allocation2 + $0xb1] sm:$0xff] %vm170_vm1, %v3365_v63  ;;  %v3899_v19 = vpack.c.bf16 %v368_v17, %v367_v16  ;;  %v375_v23 = vld [vmem:[#allocation2 + $0xf0] sm:$0xff]  ;;  %v993_v60 = vpack.c.bf16 %v928_v59, %v927_v58  ;;  %v929_v0 = vld [vmem:[#allocation2 + $0x1a] sm:$0xff]  ;;  %v930_v1 = vld [vmem:[#allocation2 + $0x22] sm:$0xff] }
  0x63   : > { %311 = vst.msk [vmem:[#allocation2 + $0x109] sm:$0xff] %vm170_vm1, %v3380_v2  ;;  %v376_v24 = vld [vmem:[#allocation2 + $0xf8] sm:$0xff]  ;;  %v3960_v2 = vpack.c.bf16 %v930_v1, %v929_v0  ;;  %v938_v40 = vld [vmem:[#allocation2 + $0x82] sm:$0xff] }
  0x64   : > { %312 = vst.msk [vmem:[#allocation2 + $0x111] sm:$0xff] %vm170_vm1, %v3381_v4  ;;  %v383_v25 = vld [vmem:[#allocation2 + $0x150] sm:$0xff]  ;;  %v3910_v27 = vpack.c.bf16 %v376_v24, %v375_v23  ;;  %v1508_v23 = vld [vmem:[#allocation2 + $0x81] sm:$0xff]  ;;  %v1510_v35 = vld [vmem:[#allocation2 + $0x99] sm:$0xff] }
  0x65   : > { %319 = vst.msk [vmem:[#allocation2 + $0x169] sm:$0xff] %vm170_vm1, %v3396_v9  ;;  %v384_v26 = vld [vmem:[#allocation2 + $0x158] sm:$0xff] }
  0x66   : > { %320 = vst.msk [vmem:[#allocation2 + $0x171] sm:$0xff] %vm170_vm1, %v3397_v10  ;;  %v359_v20 = vld [vmem:[#allocation2 + $0x30] sm:$0xff]  ;;  %v3912_v30 = vpack.c.bf16 %v384_v26, %v383_v25  ;;  %v1505_v10 = vld [vmem:[#allocation2 + $0x61] sm:$0xff] }
  0x67   : > { %295 = vst.msk [vmem:[#allocation2 + $0x49] sm:$0xff] %vm170_vm1, %v3348_v13  ;;  %v360_v21 = vld [vmem:[#allocation2 + $0x38] sm:$0xff]  ;;  %v3980_v12 = vpack.c.bf16 %v1506_v11, %v1505_v10  ;;  %v935_v26 = vld [vmem:[#allocation2 + $0x62] sm:$0xff] }
  0x68   : > { %3188 = vmatmul.msk.bf16.gmra.mxu2 %vm170_vm1, %v3889_v14  ;;  %296 = vst.msk [vmem:[#allocation2 + $0x51] sm:$0xff] %vm170_vm1, %v3349_v15  ;;  %v3906_v22 = vpack.c.bf16 %v360_v21, %v359_v20  ;;  %v369_v28 = vld [vmem:[#allocation2 + $0xa8] sm:$0xff]  ;;  %v1501_v61 = vld [vmem:[#allocation2 + $0x31] sm:$0xff]  ;;  %v1502_v62 = vld [vmem:[#allocation2 + $0x39] sm:$0xff] }
  0x69   : > { %v370_v29 = vld [vmem:[#allocation2 + $0xb0] sm:$0xff]  ;;  %v3956_v63 = vpack.c.bf16 %v1502_v62, %v1501_v61  ;;  %v932_v7 = vld [vmem:[#allocation2 + $0x3a] sm:$0xff] }
  0x6a   : > { %3192 = vmatmul.msk.bf16.gmra.mxu3 %vm170_vm1, %v3893_v18  ;;  %v3916_v31 = vpack.c.bf16 %v370_v29, %v369_v28  ;;  %v377_v44 = vld [vmem:[#allocation2 + $0x108] sm:$0xff]  ;;  %v931_v6 = vld [vmem:[#allocation2 + $0x32] sm:$0xff]  ;;  %v937_v39 = vld [vmem:[#allocation2 + $0x7a] sm:$0xff] }
  0x6b   : > { %v378_v45 = vld [vmem:[#allocation2 + $0x110] sm:$0xff]  ;;  %v3972_v9 = vpack.c.bf16 %v932_v7, %v931_v6  ;;  %v1507_v21 = vld [vmem:[#allocation2 + $0x79] sm:$0xff] }
  0x6c   : > { %3185 = vmatmul.msk.bf16.gmra.mxu1 %vm170_vm1, %v3899_v19  ;;  %v385_v46 = vld [vmem:[#allocation2 + $0x168] sm:$0xff]  ;;  %v3942_v48 = vpack.c.bf16 %v378_v45, %v377_v44  ;;  %v3996_v24 = vpack.c.bf16 %v1508_v23, %v1507_v21  ;;  %v1509_v34 = vld [vmem:[#allocation2 + $0x91] sm:$0xff]  ;;  %v4028_v44 = vpack.c.bf16 %v938_v40, %v937_v39  ;;  %v940_v59 = vld [vmem:[#allocation2 + $0x9a] sm:$0xff] }
  0x6d   : > { %v386_v47 = vld [vmem:[#allocation2 + $0x170] sm:$0xff]  ;;  %v4018_v37 = vpack.c.bf16 %v1510_v35, %v1509_v34  ;;  %v1515_v39 = vld [vmem:[#allocation2 + $0xd9] sm:$0xff]  ;;  %v1516_v40 = vld [vmem:[#allocation2 + $0xe1] sm:$0xff] }
  0x6e   : > { %v361_v32 = vld [vmem:[#allocation2 + $0x48] sm:$0xff]  ;;  %v3944_v52 = vpack.c.bf16 %v386_v47, %v385_v46  ;;  %v939_v58 = vld [vmem:[#allocation2 + $0x92] sm:$0xff] }
  0x6f   : > { %v362_v36 = vld [vmem:[#allocation2 + $0x50] sm:$0xff]  ;;  %v4056_v61 = vpack.c.bf16 %v940_v59, %v939_v58  ;;  %v943_v59 = vld [vmem:[#allocation2 + $0xc2] sm:$0xff] }
  0x70   : > { %v3938_v42 = vpack.c.bf16 %v362_v36, %v361_v32  ;;  %v1504_v4 = vld [vmem:[#allocation2 + $0x51] sm:$0xff]  ;;  %v1511_v51 = vld [vmem:[#allocation2 + $0xa9] sm:$0xff] }
  0x71   : > { %v933_v13 = vld [vmem:[#allocation2 + $0x4a] sm:$0xff]  ;;  %v934_v15 = vld [vmem:[#allocation2 + $0x52] sm:$0xff] }
  0x72   : > { %3181 = vmatmul.msk.bf16.gmra.mxu0 %vm170_vm1, %v3906_v22  ;;  %v3984_v16 = vpack.c.bf16 %v934_v15, %v933_v13  ;;  %v936_v28 = vld [vmem:[#allocation2 + $0x6a] sm:$0xff]  ;;  %v942_v15 = vld [vmem:[#allocation2 + $0xb2] sm:$0xff] }
  0x73   : > { %v4002_v29 = vpack.c.bf16 %v936_v28, %v935_v26  ;;  %v1514_v6 = vld [vmem:[#allocation2 + $0xc9] sm:$0xff] }
  0x74   : > { %v941_v13 = vld [vmem:[#allocation2 + $0xaa] sm:$0xff] }
  0x75   : > { %v4084_v23 = vpack.c.bf16 %v942_v15, %v941_v13 }
  0x78   : > { %3189 = vmatmul.msk.bf16.gmra.mxu2 %vm170_vm1, %v3910_v27 }
  0x7a   : > { %3193 = vmatmul.msk.bf16.gmra.mxu3 %vm170_vm1, %v3912_v30 }
  0x7c   : > { %3186 = vmatmul.msk.bf16.gmra.mxu1 %vm170_vm1, %v3916_v31 }
  0x82   : > { %3182 = vmatmul.msk.bf16.gmra.mxu0 %vm170_vm1, %v3938_v42 }
  0x88   : > { %3190 = vmatmul.msk.bf16.gmra.mxu2 %vm170_vm1, %v3942_v48 }
  0x8a   : > { %3194 = vmatmul.msk.bf16.gmra.mxu3 %vm170_vm1, %v3944_v52 }
  0x8c   : > { %3196 = vmatmul.msk.bf16.vlgmr.msrb.gmra.mxu1 %vm170_vm1, %v707_v53  ;;  %v1512_v53 = vld [vmem:[#allocation2 + $0xb1] sm:$0xff] }
  0x8d   : > { %v4046_v56 = vpack.c.bf16 %v1512_v53, %v1511_v51  ;;  %v4100_v53 = vpack.c.bf16 %v1516_v40, %v1515_v39 }
  0x8f   : > { %4540 = vst [vmem:[#allocation8_spill] sm:$0xff] %v4046_v56 }
  0x90   : > { %4546 = vst [vmem:[#allocation14_spill] sm:$0xff] %v4100_v53 }
  0x92   : > { %3247 = vmatmul.msk.bf16.vlgmr.msrb.gmra.mxu0 %vm170_vm1, %v1565_v57 }
  0x98   : > { %3213 = vmatmul.msk.bf16.vlgmr.msrb.gmra.mxu2 %vm170_vm1, %v993_v60 }
  0x9a   : > { %3230 = vmatmul.msk.bf16.vlgmr.msrb.gmra.mxu3 %vm170_vm1, %v3880_v3  ;;  %v1503_v3 = vld [vmem:[#allocation2 + $0x49] sm:$0xff] }
  0x9b   : > { %v3968_v5 = vpack.c.bf16 %v1504_v4, %v1503_v3  ;;  %v1513_v4 = vld [vmem:[#allocation2 + $0xc1] sm:$0xff] }
  0x9c   : > { %3197 = vmatmul.msk.bf16.gmra.mxu1 %vm170_vm1, %v1565_v57  ;;  %v4074_v10 = vpack.c.bf16 %v1514_v6, %v1513_v4  ;;  %v944_v4 = vld [vmem:[#allocation2 + $0xca] sm:$0xff] }
  0x9d   : > { %v4107_v15 = vpack.c.bf16 %v944_v4, %v943_v59 }
  0x9e   : > { %4543 = vst [vmem:[#allocation11_spill] sm:$0xff] %v4074_v10 }
  0x9f   : > { %4547 = vst [vmem:[#allocation15_spill] sm:$0xff] %v4107_v15 }
  0xa0   : > { %v3992_v20 = vpop.f32.mrf.mxu0 }
  0xa2   : > { %3248 = vmatmul.msk.bf16.gmra.mxu0 %vm170_vm1, %v3956_v63 }
  0xa5   : > { %v3986_v17 = vpop.f32.mrf.mxu1 }
  0xa8   : > { %3214 = vmatmul.msk.bf16.gmra.mxu2 %vm170_vm1, %v3960_v2  ;;  %v4004_v32 = vpop.f32.mrf.mxu0 }
  0xaa   : > { %3231 = vmatmul.msk.bf16.gmra.mxu3 %vm170_vm1, %v3906_v22 }
  0xac   : > { %3198 = vmatmul.msk.bf16.gmra.mxu1 %vm170_vm1, %v3956_v63 }
  0xad   : > { %v3998_v25 = vpop.f32.mrf.mxu1 }
  0xb2   : > { %3249 = vmatmul.msk.bf16.gmra.mxu0 %vm170_vm1, %v3968_v5 }
  0xb8   : > { %3215 = vmatmul.msk.bf16.gmra.mxu2 %vm170_vm1, %v3972_v9 }
  0xba   : > { %3232 = vmatmul.msk.bf16.gmra.mxu3 %vm170_vm1, %v3938_v42 }
  0xbc   : > { %3199 = vmatmul.msk.bf16.gmra.mxu1 %vm170_vm1, %v3968_v5 }
  0xc2   : > { %3250 = vmatmul.msk.bf16.gmra.mxu0 %vm170_vm1, %v3980_v12 }
  0xc8   : > { %3216 = vmatmul.msk.bf16.gmra.mxu2 %vm170_vm1, %v3984_v16 }
  0xca   : > { %3233 = vmatmul.msk.bf16.gmra.mxu3 %vm170_vm1, %v3737_v8 }
  0xcc   : > { %3200 = vmatmul.msk.bf16.gmra.mxu1 %vm170_vm1, %v3980_v12 }
  0xd2   : > { %3251 = vmatmul.msk.bf16.gmra.mxu0 %vm170_vm1, %v3996_v24 }
  0xd8   : > { %3217 = vmatmul.msk.bf16.gmra.mxu2 %vm170_vm1, %v4002_v29 }
  0xd9   : > { %v4008_v8 = vpop.f32.mrf.mxu1 }
  0xda   : > { %3234 = vmatmul.msk.bf16.gmra.mxu3 %vm170_vm1, %v3867_v55 }
  0xdb   : > { %v4012_v33 = vpop.f32.mrf.mxu2 }
  0xdc   : > { %3201 = vmatmul.msk.bf16.gmra.mxu1 %vm170_vm1, %v3996_v24 }
  0xdd   : > { %v4016_v36 = vpop.f32.mrf.mxu3 }
  0xdf   : > { %v4020_v38 = vpop.f32.mrf.mxu0 }
  0xe1   : > { %v4022_v41 = vpop.f32.mrf.mxu1 }
  0xe2   : > { %3252 = vmatmul.msk.bf16.gmra.mxu0 %vm170_vm1, %v4018_v37 }
  0xe3   : > { %v4026_v55 = vpop.f32.mrf.mxu2 }
  0xe5   : > { %v4030_v45 = vpop.f32.mrf.mxu3 }
  0xe7   : > { %v4032_v46 = vpop.f32.mrf.mxu0 }
  0xe8   : > { %3218 = vmatmul.msk.bf16.gmra.mxu2 %vm170_vm1, %v4028_v44 }
  0xe9   : > { %v4036_v47 = vpop.f32.mrf.mxu1 }
  0xea   : > { %3235 = vmatmul.msk.bf16.gmra.mxu3 %vm170_vm1, %v3899_v19 }
  0xeb   : > { %v4040_v50 = vpop.f32.mrf.mxu2 }
  0xec   : > { %3202 = vmatmul.msk.bf16.gmra.mxu1 %vm170_vm1, %v4018_v37 }
  0xed   : > { %v4044_v54 = vpop.f32.mrf.mxu3 }
  0xee   : > { %4539 = vst [vmem:[#allocation7_spill] sm:$0xff] %v4044_v54 }
  0xef   : > { %v4048_v57 = vpop.f32.mrf.mxu0 }
  0xf1   : > { %v4050_v60 = vpop.f32.mrf.mxu1 }
  0xf2   : > { %3253 = vmatmul.msk.bf16.gmra.mxu0 %vm170_vm1, %v4046_v56 }
  0xf3   : > { %v4054_v19 = vpop.f32.mrf.mxu2 }
  0xf5   : > { %v4058_v62 = vpop.f32.mrf.mxu3 }
  0xf6   : > { %4541 = vst [vmem:[#allocation9_spill] sm:$0xff] %v4058_v62 }
  0xf7   : > { %v4060_v0 = vpop.f32.mrf.mxu0 }
  0xf8   : > { %3219 = vmatmul.msk.bf16.gmra.mxu2 %vm170_vm1, %v4056_v61 }
  0xf9   : > { %v4064_v1 = vpop.f32.mrf.mxu1 }
  0xfa   : > { %3236 = vmatmul.msk.bf16.gmra.mxu3 %vm170_vm1, %v3916_v31 }
  0xfb   : > { %v4068_v3 = vpop.f32.mrf.mxu2 }
  0xfc   : > { %3203 = vmatmul.msk.bf16.gmra.mxu1 %vm170_vm1, %v4046_v56 }
  0xfd   : > { %v4072_v7 = vpop.f32.mrf.mxu3 }
  0xfe   : > { %4542 = vst [vmem:[#allocation10_spill] sm:$0xff] %v4072_v7 }
  0xff   : > { %v4076_v11 = vpop.f32.mrf.mxu0 }
 0x101   : > { %v4078_v21 = vpop.f32.mrf.mxu1 }
 0x102   : > { %3254 = vmatmul.msk.bf16.gmra.mxu0 %vm170_vm1, %v4074_v10 }
 0x103   : > { %v4082_v31 = vpop.f32.mrf.mxu2 }
 0x105   : > { %v4086_v26 = vpop.f32.mrf.mxu3 }
 0x106   : > { %4544 = vst [vmem:[#allocation12_spill] sm:$0xff] %v4086_v26 }
 0x107   : > { %v4088_v28 = vpop.f32.mrf.mxu0 }
 0x108   : > { %3220 = vmatmul.msk.bf16.gmra.mxu2 %vm170_vm1, %v4084_v23 }
 0x109   : > { %v783_v34 = vpop.f32.mrf.mxu1 }
 0x10a   : > { %3237 = vmatmul.msk.bf16.gmra.mxu3 %vm170_vm1, %v3853_v43  ;;  %v863_v40 = vadd.f32 %v783_v34, %v3992_v20  ;;  %v945_v20 = vld [vmem:[#allocation2 + $0xda] sm:$0xff]  ;;  %v946_v34 = vld [vmem:[#allocation2 + $0xe2] sm:$0xff] }
 0x10b   : > { %v4094_v35 = vpop.f32.mrf.mxu2 }
 0x10c   : > { %3204 = vmatmul.msk.bf16.gmra.mxu1 %vm170_vm1, %v4074_v10 }
 0x10d   : > { %v4098_v51 = vpop.f32.mrf.mxu3 }
 0x10e   : > { %4545 = vst [vmem:[#allocation13_spill] sm:$0xff] %v4098_v51 }
 0x10f   : > { %v1641_v58 = vpop.f32.mrf.mxu0 }
 0x111   : > { %v785_v6 = vpop.f32.mrf.mxu1 }
 0x112   : > { %3255 = vmatmul.msk.bf16.gmra.mxu0 %vm170_vm1, %v4100_v53  ;;  %v864_v43 = vadd.f32 %v785_v6, %v4004_v32  ;;  %v1517_v32 = vld [vmem:[#allocation2 + $0xf1] sm:$0xff]  ;;  %v1518_v6 = vld [vmem:[#allocation2 + $0xf9] sm:$0xff] }
 0x113   : > { %v4105_v13 = vpop.f32.mrf.mxu2 }
 0x115   : > { %v4109_v26 = vpop.f32.mrf.mxu3 }
 0x116   : > { %4548 = vst [vmem:[#allocation16_spill] sm:$0xff] %v4109_v26  ;;  %v4119_v26 = vpack.c.bf16 %v1518_v6, %v1517_v32 }
 0x117   : > { %v1643_v10 = vpop.f32.mrf.mxu0 }
 0x118   : > { %3221 = vmatmul.msk.bf16.gmra.mxu2 %vm170_vm1, %v4107_v15 }
 0x119   : > { %v788_v39 = vpop.f32.mrf.mxu1 }
 0x11a   : > { %3238 = vmatmul.msk.bf16.gmra.mxu3 %vm170_vm1, %v3889_v14  ;;  %v865_v51 = vadd.f32 %v788_v39, %v4020_v38  ;;  %v4126_v39 = vpack.c.bf16 %v946_v34, %v945_v20 }
 0x11b   : > { %v1069_v7 = vpop.f32.mrf.mxu2 }
 0x11c   : > { %v1149_v62 = vadd.f32 %v1069_v7, %v863_v40  ;;  %3205 = vmatmul.msk.bf16.gmra.mxu1 %vm170_vm1, %v4100_v53 }
 0x11d   : > { %v1355_v59 = vpop.f32.mrf.mxu3 }
 0x11e   : > { %v1435_v4 = vadd.f32 %v1355_v59, %v1149_v62 }
 0x11f   : > { %v1646_v15 = vpop.f32.mrf.mxu0 }
 0x120   : > { %v4121_v56 = vadd.f32 %v1641_v58, %v1435_v4 }
 0x121   : > { %v790_v54 = vpop.f32.mrf.mxu1 }
 0x122   : > { %3256 = vmatmul.msk.bf16.gmra.mxu0 %vm170_vm1, %v4119_v26  ;;  %v866_v14 = vadd.f32 %v790_v54, %v4032_v46  ;;  %v1519_v46 = vld [vmem:[#allocation2 + $0x109] sm:$0xff]  ;;  %v1520_v54 = vld [vmem:[#allocation2 + $0x111] sm:$0xff] }
 0x123   : > { %v1071_v38 = vpop.f32.mrf.mxu2  ;;  %v4137_v34 = vpack.c.bf16 %v1520_v54, %v1519_v46 }
 0x124   : > { %v1150_v7 = vadd.f32 %v1071_v38, %v864_v43 }
 0x125   : > { %v1357_v40 = vpop.f32.mrf.mxu3 }
 0x126   : > { %v1436_v53 = vadd.f32 %v1357_v40, %v1150_v7  ;;  %v948_v7 = vld [vmem:[#allocation2 + $0xfa] sm:$0xff] }
 0x127   : > { %v1648_v62 = vpop.f32.mrf.mxu0 }
 0x128   : > { %3222 = vmatmul.msk.bf16.gmra.mxu2 %vm170_vm1, %v4126_v39  ;;  %v4130_v58 = vadd.f32 %v1643_v10, %v1436_v53  ;;  %v947_v53 = vld [vmem:[#allocation2 + $0xf2] sm:$0xff] }
 0x129   : > { %v793_v32 = vpop.f32.mrf.mxu1 }
 0x12a   : > { %4549 = vst [vmem:[#allocation17_spill] sm:$0xff] %v4130_v58  ;;  %3239 = vmatmul.msk.bf16.gmra.mxu3 %vm170_vm1, %v3910_v27  ;;  %v867_v6 = vadd.f32 %v793_v32, %v4048_v57  ;;  %v4144_v32 = vpack.c.bf16 %v948_v7, %v947_v53 }
 0x12b   : > { %v1074_v59 = vpop.f32.mrf.mxu2 }
 0x12c   : > { %v1151_v43 = vadd.f32 %v1074_v59, %v865_v51  ;;  %3206 = vmatmul.msk.bf16.gmra.mxu1 %vm170_vm1, %v4119_v26 }
 0x12d   : > { %v1360_v4 = vpop.f32.mrf.mxu3 }
 0x12e   : > { %v1437_v20 = vadd.f32 %v1360_v4, %v1151_v43 }
 0x12f   : > { %v1651_v38 = vpop.f32.mrf.mxu0 }
 0x130   : > { %v4139_v10 = vadd.f32 %v1646_v15, %v1437_v20  ;;  %v1522_v20 = vld [vmem:[#allocation2 + $0x129] sm:$0xff] }
 0x131   : > { %v795_v40 = vpop.f32.mrf.mxu1 }
 0x132   : > { %3257 = vmatmul.msk.bf16.gmra.mxu0 %vm170_vm1, %v4137_v34  ;;  %v868_v27 = vadd.f32 %v795_v40, %v4060_v0  ;;  %v1521_v0 = vld [vmem:[#allocation2 + $0x121] sm:$0xff] }
 0x133   : > { %v1076_v57 = vpop.f32.mrf.mxu2  ;;  %v4155_v40 = vpack.c.bf16 %v1522_v20, %v1521_v0 }
 0x134   : > { %v1152_v51 = vadd.f32 %v1076_v57, %v866_v14 }
 0x135   : > { %v1362_v59 = vpop.f32.mrf.mxu3  ;;  %4551 = vst [vmem:[#allocation19_spill] sm:$0xff] %v4155_v40 }
 0x136   : > { %v1438_v58 = vadd.f32 %v1362_v59, %v1152_v51  ;;  %v950_v51 = vld [vmem:[#allocation2 + $0x112] sm:$0xff] }
 0x137   : > { %v1653_v43 = vpop.f32.mrf.mxu0 }
 0x138   : > { %3223 = vmatmul.msk.bf16.gmra.mxu2 %vm170_vm1, %v4144_v32  ;;  %v4148_v15 = vadd.f32 %v1648_v62, %v1438_v58  ;;  %v949_v58 = vld [vmem:[#allocation2 + $0x10a] sm:$0xff] }
 0x139   : > { %v798_v46 = vpop.f32.mrf.mxu1 }
 0x13a   : > { %4550 = vst [vmem:[#allocation18_spill] sm:$0xff] %v4148_v15  ;;  %3240 = vmatmul.msk.bf16.gmra.mxu3 %vm170_vm1, %v3942_v48  ;;  %v869_v54 = vadd.f32 %v798_v46, %v4076_v11  ;;  %v4162_v46 = vpack.c.bf16 %v950_v51, %v949_v58 }
 0x13b   : > { %v1079_v4 = vpop.f32.mrf.mxu2 }
 0x13c   : > { %v1153_v14 = vadd.f32 %v1079_v4, %v867_v6  ;;  %3207 = vmatmul.msk.bf16.gmra.mxu1 %vm170_vm1, %v4137_v34 }
 0x13d   : > { %v1365_v53 = vpop.f32.mrf.mxu3 }
 0x13e   : > { %v1439_v7 = vadd.f32 %v1365_v53, %v1153_v14  ;;  %v1523_v53 = vld [vmem:[#allocation2 + $0x139] sm:$0xff] }
 0x13f   : > { %v1656_v57 = vpop.f32.mrf.mxu0 }
 0x140   : > { %v4157_v62 = vadd.f32 %v1651_v38, %v1439_v7  ;;  %v1524_v7 = vld [vmem:[#allocation2 + $0x141] sm:$0xff] }
 0x141   : > { %v800_v59 = vpop.f32.mrf.mxu1  ;;  %v4172_v51 = vpack.c.bf16 %v1524_v7, %v1523_v53 }
 0x142   : > { %3258 = vmatmul.msk.bf16.gmra.mxu0 %vm170_vm1, %v4155_v40  ;;  %v870_v48 = vadd.f32 %v800_v59, %v4088_v28 }
 0x143   : > { %v1081_v11 = vpop.f32.mrf.mxu2 }
 0x144   : > { %v1154_v6 = vadd.f32 %v1081_v11, %v868_v27 }
 0x145   : > { %v1367_v4 = vpop.f32.mrf.mxu3 }
 0x146   : > { %v1440_v15 = vadd.f32 %v1367_v4, %v1154_v6 }
 0x147   : > { %v1658_v14 = vpop.f32.mrf.mxu0 }
 0x148   : > { %3224 = vmatmul.msk.bf16.gmra.mxu2 %vm170_vm1, %v4162_v46  ;;  %v4166_v38 = vadd.f32 %v1653_v43, %v1440_v15  ;;  %v951_v43 = vld [vmem:[#allocation2 + $0x122] sm:$0xff]  ;;  %v952_v15 = vld [vmem:[#allocation2 + $0x12a] sm:$0xff] }
 0x149   : > { %v803_v0 = vpop.f32.mrf.mxu1 }
 0x14a   : > { %4552 = vst [vmem:[#allocation20_spill] sm:$0xff] %v4166_v38  ;;  %3241 = vmatmul.msk.bf16.gmra.mxu3 %vm170_vm1, %v3860_v49  ;;  %v871_v7 = vadd.f32 %v803_v0, %v3986_v17  ;;  %v954_v0 = vld [vmem:[#allocation2 + $0x142] sm:$0xff] }
 0x14b   : > { %v1084_v20 = vpop.f32.mrf.mxu2 }
 0x14c   : > { %v1155_v28 = vadd.f32 %v1084_v20, %v869_v54  ;;  %3208 = vmatmul.msk.bf16.gmra.mxu1 %vm170_vm1, %v4155_v40  ;;  %v4178_v54 = vpack.c.bf16 %v952_v15, %v951_v43  ;;  %v3496_v15 = vld [vmem:[%s3710_s30 + $0x78] sm:$0xff]  }
 0x14d   : > { %v1370_v27 = vpop.f32.mrf.mxu3 }
 0x14e   : > { %v1441_v58 = vadd.f32 %v1370_v27, %v1155_v28  ;;  %v1525_v27 = vld [vmem:[#allocation2 + $0x151] sm:$0xff] }
 0x14f   : > { %v1661_v59 = vpop.f32.mrf.mxu0 }
 0x150   : > { %v4174_v11 = vadd.f32 %v1656_v57, %v1441_v58 }
 0x151   : > { %v805_v6 = vpop.f32.mrf.mxu1 }
 0x152   : > { %3259 = vmatmul.msk.bf16.gmra.mxu0 %vm170_vm1, %v4172_v51 }
 0x153   : > { %v1086_v49 = vpop.f32.mrf.mxu2 }
 0x154   : > { %v1156_v4 = vadd.f32 %v1086_v49, %v870_v48  ;;  %v1526_v48 = vld [vmem:[#allocation2 + $0x159] sm:$0xff] }
 0x155   : > { %v1372_v20 = vpop.f32.mrf.mxu3 }
 0x156   : > { %v1442_v38 = vadd.f32 %v1372_v20, %v1156_v4  ;;  %v4190_v4 = vpack.c.bf16 %v1526_v48, %v1525_v27 }
 0x157   : > { %v1663_v40 = vpop.f32.mrf.mxu0 }
 0x158   : > { %3225 = vmatmul.msk.bf16.gmra.mxu2 %vm170_vm1, %v4178_v54  ;;  %v4182_v53 = vadd.f32 %v1658_v14, %v1442_v38  ;;  %4554 = vst [vmem:[#allocation22_spill] sm:$0xff] %v4190_v4  ;;  %v3400_v14 = vunpack.c.l.bf16 %v3496_v15  ;;  %v3401_v38 = vunpack.c.h.bf16 %v3496_v15 }
 0x159   : > { %v808_v57 = vpop.f32.mrf.mxu1 }
 0x15a   : > { %4553 = vst [vmem:[#allocation21_spill] sm:$0xff] %v4182_v53  ;;  %3242 = vmatmul.msk.bf16.gmra.mxu3 %vm170_vm1, %v3893_v18  ;;  %v953_v18 = vld [vmem:[#allocation2 + $0x13a] sm:$0xff] }
 0x15b   : > { %v1089_v28 = vpop.f32.mrf.mxu2  ;;  %321 = vst.msk [vmem:[#allocation2 + $0x181] sm:$0xff] %vm170_vm1, %v3400_v14  ;;  %v4199_v48 = vpack.c.bf16 %v954_v0, %v953_v18  ;;  %v873_v14 = vadd.f32 %v808_v57, %v4008_v8 }
 0x15c   : > { %v1157_v58 = vadd.f32 %v1089_v28, %v871_v7  ;;  %3209 = vmatmul.msk.bf16.gmra.mxu1 %vm170_vm1, %v4172_v51  ;;  %322 = vst.msk [vmem:[#allocation2 + $0x189] sm:$0xff] %vm170_vm1, %v3401_v38  ;;  %v872_v7 = vadd.f32 %v805_v6, %v3998_v25  ;;  %v1527_v6 = vld [vmem:[#allocation2 + $0x169] sm:$0xff]  ;;  %v1528_v38 = vld [vmem:[#allocation2 + $0x171] sm:$0xff] }
 0x15d   : > { %v1375_v43 = vpop.f32.mrf.mxu3 }
 0x15e   : > { %v1443_v49 = vadd.f32 %v1375_v43, %v1157_v58 }
 0x15f   : > { %v1666_v20 = vpop.f32.mrf.mxu0 }
 0x160   : > { %v4193_v17 = vadd.f32 %v1661_v59, %v1443_v49 }
 0x161   : > { %v810_v53 = vpop.f32.mrf.mxu1 }
 0x162   : > { %3260 = vmatmul.msk.bf16.gmra.mxu0 %vm170_vm1, %v4190_v4  ;;  %v874_v57 = vadd.f32 %v810_v53, %v4022_v41  ;;  %v1529_v53 = vld [vmem:[#allocation2 + $0x181] sm:$0xff] }
 0x163   : > { %v1091_v28 = vpop.f32.mrf.mxu2 }
 0x164   : > { %v1158_v27 = vadd.f32 %v1091_v28, %v872_v7  ;;  %v4210_v28 = vpack.c.bf16 %v1528_v38, %v1527_v6 }
 0x165   : > { %v1377_v58 = vpop.f32.mrf.mxu3 }
 0x166   : > { %v1444_v43 = vadd.f32 %v1377_v58, %v1158_v27  ;;  %4556 = vst [vmem:[#allocation24_spill] sm:$0xff] %v4210_v28  ;;  %v955_v58 = vld [vmem:[#allocation2 + $0x152] sm:$0xff] }
 0x167   : > { %v1668_v15 = vpop.f32.mrf.mxu0 }
 0x168   : > { %3226 = vmatmul.msk.bf16.gmra.mxu2 %vm170_vm1, %v4199_v48  ;;  %v4203_v59 = vadd.f32 %v1663_v40, %v1444_v43  ;;  %v956_v43 = vld [vmem:[#allocation2 + $0x15a] sm:$0xff] }
 0x169   : > { %v813_v49 = vpop.f32.mrf.mxu1 }
 0x16a   : > { %4555 = vst [vmem:[#allocation23_spill] sm:$0xff] %v4203_v59  ;;  %3243 = vmatmul.msk.bf16.gmra.mxu3 %vm170_vm1, %v3912_v30  ;;  %v875_v38 = vadd.f32 %v813_v49, %v4036_v47  ;;  %v1243_v49 = vld [vmem:[#allocation2 + $0x180] sm:$0xff] }
 0x16b   : > { %v1094_v25 = vpop.f32.mrf.mxu2 }
 0x16c   : > { %v1159_v7 = vadd.f32 %v1094_v25, %v873_v14  ;;  %3210 = vmatmul.msk.bf16.gmra.mxu1 %vm170_vm1, %v4190_v4  ;;  %v4217_v25 = vpack.c.bf16 %v956_v43, %v955_v58 }
 0x16d   : > { %v1380_v18 = vpop.f32.mrf.mxu3 }
 0x16e   : > { %v1445_v0 = vadd.f32 %v1380_v18, %v1159_v7  ;;  %v1530_v18 = vld [vmem:[#allocation2 + $0x189] sm:$0xff] }
 0x16f   : > { %v1671_v27 = vpop.f32.mrf.mxu0  ;;  %v1580_v43 = vpack.c.bf16 %v1530_v18, %v1529_v53 }
 0x170   : > { %v4212_v40 = vadd.f32 %v1666_v20, %v1445_v0 }
 0x171   : > { %v815_v8 = vpop.f32.mrf.mxu1 }
 0x172   : > { %4557 = vst [vmem:[#allocation25_spill] sm:$0xff] %v4212_v40  ;;  %3261 = vmatmul.msk.bf16.gmra.mxu0 %vm170_vm1, %v4210_v28  ;;  %v876_v47 = vadd.f32 %v815_v8, %v4050_v60 }
 0x173   : > { %v1096_v30 = vpop.f32.mrf.mxu2 }
 0x174   : > { %v1160_v14 = vadd.f32 %v1096_v30, %v874_v57 }
 0x175   : > { %v1382_v59 = vpop.f32.mrf.mxu3 }
 0x176   : > { %v1446_v4 = vadd.f32 %v1382_v59, %v1160_v14 }
 0x177   : > { %v1673_v7 = vpop.f32.mrf.mxu0 }
 0x178   : > { %3227 = vmatmul.msk.bf16.gmra.mxu2 %vm170_vm1, %v4217_v25  ;;  %v4221_v20 = vadd.f32 %v1668_v15, %v1446_v4  ;;  %v957_v4 = vld [vmem:[#allocation2 + $0x16a] sm:$0xff]  ;;  %v958_v15 = vld [vmem:[#allocation2 + $0x172] sm:$0xff] }
 0x179   : > { %v818_v6 = vpop.f32.mrf.mxu1 }
 0x17a   : > { %4558 = vst [vmem:[#allocation26_spill] sm:$0xff] %v4221_v20  ;;  %3244 = vmatmul.msk.bf16.gmra.mxu3 %vm170_vm1, %v3944_v52  ;;  %v1244_v20 = vld [vmem:[#allocation2 + $0x188] sm:$0xff]  ;;  %v877_v60 = vadd.f32 %v818_v6, %v4064_v1 }
 0x17b   : > { %v1099_v41 = vpop.f32.mrf.mxu2 }
 0x17c   : > { %v1161_v0 = vadd.f32 %v1099_v41, %v875_v38  ;;  %3211 = vmatmul.msk.bf16.gmra.mxu1 %vm170_vm1, %v4210_v28  ;;  %v4232_v41 = vpack.c.bf16 %v958_v15, %v957_v4 }
 0x17d   : > { %v1385_v59 = vpop.f32.mrf.mxu3 }
 0x17e   : > { %v1447_v58 = vadd.f32 %v1385_v59, %v1161_v0  ;;  %v1294_v0 = vpack.c.bf16 %v1244_v20, %v1243_v49 }
 0x17f   : > { %v1676_v57 = vpop.f32.mrf.mxu0 }
 0x180   : > { %v4228_v30 = vadd.f32 %v1671_v27, %v1447_v58 }
 0x181   : > { %v820_v14 = vpop.f32.mrf.mxu1 }
 0x182   : > { %3262 = vmatmul.msk.bf16.gmra.mxu0 %vm170_vm1, %v1580_v43  ;;  %v878_v15 = vadd.f32 %v820_v14, %v4078_v21 }
 0x183   : > { %v1101_v52 = vpop.f32.mrf.mxu2 }
 0x184   : > { %v1162_v38 = vadd.f32 %v1101_v52, %v876_v47 }
 0x185   : > { %v1387_v28 = vpop.f32.mrf.mxu3 }
 0x186   : > { %v1448_v40 = vadd.f32 %v1387_v28, %v1162_v38 }
 0x187   : > { %v1678_v53 = vpop.f32.mrf.mxu0 }
 0x188   : > { %3228 = vmatmul.msk.bf16.gmra.mxu2 %vm170_vm1, %v4232_v41  ;;  %v4236_v27 = vadd.f32 %v1673_v7, %v1448_v40 }
 0x189   : > { %v823_v18 = vpop.f32.mrf.mxu1 }
 0x18a   : > { %3245 = vmatmul.msk.bf16.gmra.mxu3 %vm170_vm1, %v1294_v0 }
 0x18b   : > { %v1104_v8 = vpop.f32.mrf.mxu2 }
 0x18c   : > { %v1163_v59 = vadd.f32 %v1104_v8, %v877_v60  ;;  %3264 = vmatmul.msk.bf16.vlgmr.msra.gmra.mxu1 %vm170_vm1, %v3960_v2 }
 0x18d   : > { %v1390_v58 = vpop.f32.mrf.mxu3 }
 0x18e   : > { %v1449_v43 = vadd.f32 %v1390_v58, %v1163_v59 }
 0x18f   : > { %v1681_v28 = vpop.f32.mrf.mxu0 }
 0x190   : > { %v4242_v20 = vadd.f32 %v1676_v57, %v1449_v43  ;;  %v879_v57 = vadd.f32 %v823_v18, %v4012_v33 }
 0x191   : > { %v825_v4 = vpop.f32.mrf.mxu1 }
 0x192   : > { %3315 = vmatmul.msk.bf16.vlgmr.msra.gmra.mxu0 %vm170_vm1, %v3972_v9 }
 0x193   : > { %v1106_v40 = vpop.f32.mrf.mxu2 }
 0x194   : > { %v1164_v1 = vadd.f32 %v1106_v40, %v878_v15 }
 0x195   : > { %v1392_v7 = vpop.f32.mrf.mxu3 }
 0x196   : > { %v1450_v6 = vadd.f32 %v1392_v7, %v1164_v1  ;;  %v2076_v7 = vld [vmem:[#allocation2 + $0x60] sm:$0xff] }
 0x197   : > { %v1683_v47 = vpop.f32.mrf.mxu0 }
 0x198   : > { %3281 = vmatmul.msk.bf16.vlgmr.msra.gmra.mxu2 %vm170_vm1, %v3906_v22  ;;  %v4249_v2 = vadd.f32 %v1678_v53, %v1450_v6  ;;  %v880_v22 = vadd.f32 %v825_v4, %v4026_v55 }
 0x199   : > { %v828_v52 = vpop.f32.mrf.mxu1 }
 0x19a   : > { %3298 = vmatmul.msk.bf16.vlgmr.msra.gmra.mxu3 %vm170_vm1, %v3956_v63  ;;  %v881_v43 = vadd.f32 %v828_v52, %v4040_v50 }
 0x19b   : > { %v1109_v21 = vpop.f32.mrf.mxu2 }
 0x19c   : > { %v1165_v14 = vadd.f32 %v1109_v21, %v879_v57  ;;  %3265 = vmatmul.msk.bf16.gmra.mxu1 %vm170_vm1, %v3972_v9 }
 0x19d   : > { %v1395_v49 = vpop.f32.mrf.mxu3 }
 0x19e   : > { %v1451_v38 = vadd.f32 %v1395_v49, %v1165_v14 }
 0x19f   : > { %v1686_v0 = vpop.f32.mrf.mxu0 }
 0x1a0   : > { %v4256_v60 = vadd.f32 %v1681_v28, %v1451_v38 }
 0x1a1   : > { %v830_v8 = vpop.f32.mrf.mxu1 }
 0x1a2   : > { %3316 = vmatmul.msk.bf16.gmra.mxu0 %vm170_vm1, %v3984_v16 }
 0x1a3   : > { %v1111_v33 = vpop.f32.mrf.mxu2 }
 0x1a4   : > { %v1166_v53 = vadd.f32 %v1111_v33, %v880_v22 }
 0x1a5   : > { %v1397_v18 = vpop.f32.mrf.mxu3 }
 0x1a6   : > { %v1452_v63 = vadd.f32 %v1397_v18, %v1166_v53  ;;  %v2078_v18 = vld [vmem:[#allocation2 + $0x78] sm:$0xff] }
 0x1a7   : > { %v1688_v59 = vpop.f32.mrf.mxu0 }
 0x1a8   : > { %3282 = vmatmul.msk.bf16.gmra.mxu2 %vm170_vm1, %v3938_v42  ;;  %v4263_v9 = vadd.f32 %v1683_v47, %v1452_v63  ;;  %v2077_v42 = vld [vmem:[#allocation2 + $0x68] sm:$0xff]  ;;  %v882_v47 = vadd.f32 %v830_v8, %v4054_v19  ;;  %v2079_v63 = vld [vmem:[#allocation2 + $0x80] sm:$0xff] }
 0x1a9   : > { %v833_v58 = vpop.f32.mrf.mxu1  ;;  %v2140_v52 = vpack.c.bf16 %v2077_v42, %v2076_v7 }
 0x1aa   : > { %3299 = vmatmul.msk.bf16.gmra.mxu3 %vm170_vm1, %v3968_v5  ;;  %v883_v38 = vadd.f32 %v833_v58, %v4068_v3  ;;  %v2141_v58 = vpack.c.bf16 %v2079_v63, %v2078_v18 }
 0x1ab   : > { %v1114_v55 = vpop.f32.mrf.mxu2 }
 0x1ac   : > { %v1167_v28 = vadd.f32 %v1114_v55, %v881_v43  ;;  %3266 = vmatmul.msk.bf16.gmra.mxu1 %vm170_vm1, %v3984_v16 }
 0x1ad   : > { %v1400_v4 = vpop.f32.mrf.mxu3 }
 0x1ae   : > { %v1453_v15 = vadd.f32 %v1400_v4, %v1167_v28 }
 0x1af   : > { %v1691_v40 = vpop.f32.mrf.mxu0 }
 0x1b0   : > { %v4270_v1 = vadd.f32 %v1686_v0, %v1453_v15 }
 0x1b1   : > { %v835_v6 = vpop.f32.mrf.mxu1 }
 0x1b2   : > { %3317 = vmatmul.msk.bf16.gmra.mxu0 %vm170_vm1, %v4002_v29  ;;  %v884_v43 = vadd.f32 %v835_v6, %v4082_v31 }
 0x1b3   : > { %v1116_v50 = vpop.f32.mrf.mxu2 }
 0x1b4   : > { %v1168_v5 = vadd.f32 %v1116_v50, %v882_v47 }
 0x1b5   : > { %v1402_v57 = vpop.f32.mrf.mxu3 }
 0x1b6   : > { %v1454_v21 = vadd.f32 %v1402_v57, %v1168_v5  ;;  %v2080_v5 = vld [vmem:[#allocation2 + $0x90] sm:$0xff] }
 0x1b7   : > { %v1693_v14 = vpop.f32.mrf.mxu0 }
 0x1b8   : > { %3283 = vmatmul.msk.bf16.gmra.mxu2 %vm170_vm1, %v2140_v52  ;;  %v4276_v16 = vadd.f32 %v1688_v59, %v1454_v21  ;;  %v2081_v52 = vld [vmem:[#allocation2 + $0x98] sm:$0xff] }
 0x1b9   : > { %v838_v49 = vpop.f32.mrf.mxu1 }
 0x1ba   : > { %3300 = vmatmul.msk.bf16.gmra.mxu3 %vm170_vm1, %v3980_v12 }
 0x1bb   : > { %v1119_v19 = vpop.f32.mrf.mxu2 }
 0x1bc   : > { %v1169_v0 = vadd.f32 %v1119_v19, %v883_v38  ;;  %3267 = vmatmul.msk.bf16.gmra.mxu1 %vm170_vm1, %v4002_v29 }
 0x1bd   : > { %v1405_v8 = vpop.f32.mrf.mxu3 }
 0x1be   : > { %v1455_v22 = vadd.f32 %v1405_v8, %v1169_v0 }
 0x1bf   : > { %v1696_v33 = vpop.f32.mrf.mxu0 }
 0x1c0   : > { %v4283_v53 = vadd.f32 %v1691_v40, %v1455_v22  ;;  %v885_v40 = vadd.f32 %v838_v49, %v4094_v35 }
 0x1c1   : > { %v840_v59 = vpop.f32.mrf.mxu1 }
 0x1c2   : > { %3318 = vmatmul.msk.bf16.gmra.mxu0 %vm170_vm1, %v4028_v44  ;;  %v886_v21 = vadd.f32 %v840_v59, %v4105_v13 }
 0x1c3   : > { %v1121_v3 = vpop.f32.mrf.mxu2 }
 0x1c4   : > { %v1170_v12 = vadd.f32 %v1121_v3, %v884_v43  ;;  %v2082_v43 = vld [vmem:[#allocation2 + $0xa8] sm:$0xff]  ;;  %v2083_v3 = vld [vmem:[#allocation2 + $0xb0] sm:$0xff] }
 0x1c5   : > { %v1407_v55 = vpop.f32.mrf.mxu3 }
 0x1c6   : > { %v1456_v28 = vadd.f32 %v1407_v55, %v1170_v12  ;;  %v2143_v55 = vpack.c.bf16 %v2083_v3, %v2082_v43  ;;  %v4564_v3 = vld [vmem:[#allocation11_spill] sm:$0xff] }
 0x1c7   : > { %v1698_v4 = vpop.f32.mrf.mxu0 }
 0x1c8   : > { %3284 = vmatmul.msk.bf16.gmra.mxu2 %vm170_vm1, %v2141_v58  ;;  %v4289_v29 = vadd.f32 %v1693_v14, %v1456_v28  ;;  %v2142_v14 = vpack.c.bf16 %v2081_v52, %v2080_v5 }
 0x1c9   : > { %v843_v15 = vpop.f32.mrf.mxu1 }
 0x1ca   : > { %3301 = vmatmul.msk.bf16.gmra.mxu3 %vm170_vm1, %v3996_v24  ;;  %v887_v8 = vadd.f32 %v843_v15, %v4016_v36 }
 0x1cb   : > { %v1124_v31 = vpop.f32.mrf.mxu2 }
 0x1cc   : > { %v1171_v7 = vadd.f32 %v1124_v31, %v885_v40  ;;  %3268 = vmatmul.msk.bf16.gmra.mxu1 %vm170_vm1, %v4028_v44  ;;  %v4559_v31 = vld [vmem:[#allocation7_spill] sm:$0xff] }
 0x1cd   : > { %v1410_v42 = vpop.f32.mrf.mxu3 }
 0x1ce   : > { %v1457_v6 = vadd.f32 %v1410_v42, %v1171_v7  ;;  %v4560_v42 = vld [vmem:[#allocation8_spill] sm:$0xff] }
 0x1cf   : > { %v1701_v47 = vpop.f32.mrf.mxu0 }
 0x1d0   : > { %v4296_v50 = vadd.f32 %v1696_v33, %v1457_v6 }
 0x1d1   : > { %v845_v57 = vpop.f32.mrf.mxu1 }
 0x1d2   : > { %3319 = vmatmul.msk.bf16.gmra.mxu0 %vm170_vm1, %v4056_v61  ;;  %v888_v58 = vadd.f32 %v845_v57, %v4030_v45 }
 0x1d3   : > { %v1126_v35 = vpop.f32.mrf.mxu2 }
 0x1d4   : > { %v1172_v24 = vadd.f32 %v1126_v35, %v886_v21  ;;  %v2084_v21 = vld [vmem:[#allocation2 + $0xc0] sm:$0xff]  ;;  %v2085_v35 = vld [vmem:[#allocation2 + $0xc8] sm:$0xff] }
 0x1d5   : > { %v1412_v49 = vpop.f32.mrf.mxu3 }
 0x1d6   : > { %v1458_v38 = vadd.f32 %v1412_v49, %v1172_v24 }
 0x1d7   : > { %v1703_v19 = vpop.f32.mrf.mxu0 }
 0x1d8   : > { %3285 = vmatmul.msk.bf16.gmra.mxu2 %vm170_vm1, %v2142_v14  ;;  %v4302_v44 = vadd.f32 %v1698_v4, %v1458_v38  ;;  %v4561_v14 = vld [vmem:[#allocation9_spill] sm:$0xff]  ;;  %v4562_v38 = vld [vmem:[#allocation15_spill] sm:$0xff] }
 0x1d9   : > { %v848_v0 = vpop.f32.mrf.mxu1 }
 0x1da   : > { %3302 = vmatmul.msk.bf16.gmra.mxu3 %vm170_vm1, %v4018_v37  ;;  %v889_v7 = vadd.f32 %v848_v0, %v4559_v31  ;;  %v2087_v31 = vld [vmem:[#allocation2 + $0xe0] sm:$0xff] }
 0x1db   : > { %v1129_v13 = vpop.f32.mrf.mxu2 }
 0x1dc   : > { %v1173_v22 = vadd.f32 %v1129_v13, %v887_v8  ;;  %3269 = vmatmul.msk.bf16.gmra.mxu1 %vm170_vm1, %v4056_v61  ;;  %v2144_v8 = vpack.c.bf16 %v2085_v35, %v2084_v21 }
 0x1dd   : > { %v1415_v33 = vpop.f32.mrf.mxu3 }
 0x1de   : > { %v1459_v18 = vadd.f32 %v1415_v33, %v1173_v22 }
 0x1df   : > { %v1706_v63 = vpop.f32.mrf.mxu0 }
 0x1e0   : > { %v4309_v59 = vadd.f32 %v1701_v47, %v1459_v18 }
 0x1e1   : > { %v850_v12 = vpop.f32.mrf.mxu1 }
 0x1e2   : > { %3320 = vmatmul.msk.bf16.gmra.mxu0 %vm170_vm1, %v4084_v23  ;;  %v890_v49 = vadd.f32 %v850_v12, %v4561_v14  ;;  %v4566_v14 = vld [vmem:[#allocation13_spill] sm:$0xff] }
 0x1e3   : > { %v1131_v36 = vpop.f32.mrf.mxu2 }
 0x1e4   : > { %v1174_v37 = vadd.f32 %v1131_v36, %v888_v58 }
 0x1e5   : > { %v1417_v28 = vpop.f32.mrf.mxu3 }
 0x1e6   : > { %v1460_v4 = vadd.f32 %v1417_v28, %v1174_v37 }
 0x1e7   : > { %v1708_v15 = vpop.f32.mrf.mxu0 }
 0x1e8   : > { %3286 = vmatmul.msk.bf16.gmra.mxu2 %vm170_vm1, %v2143_v55  ;;  %v4315_v61 = vadd.f32 %v1703_v19, %v1460_v4  ;;  %v2086_v4 = vld [vmem:[#allocation2 + $0xd8] sm:$0xff] }
 0x1e9   : > { %v853_v40 = vpop.f32.mrf.mxu1 }
 0x1ea   : > { %3303 = vmatmul.msk.bf16.gmra.mxu3 %vm170_vm1, %v4560_v42 }
 0x1eb   : > { %v1134_v45 = vpop.f32.mrf.mxu2 }
 0x1ec   : > { %v1175_v6 = vadd.f32 %v1134_v45, %v889_v7  ;;  %3270 = vmatmul.msk.bf16.gmra.mxu1 %vm170_vm1, %v4084_v23  ;;  %v4565_v7 = vld [vmem:[#allocation12_spill] sm:$0xff] }
 0x1ed   : > { %v1420_v47 = vpop.f32.mrf.mxu3 }
 0x1ee   : > { %v1461_v5 = vadd.f32 %v1420_v47, %v1175_v6  ;;  %v2145_v6 = vpack.c.bf16 %v2087_v31, %v2086_v4 }
 0x1ef   : > { %v1711_v52 = vpop.f32.mrf.mxu0 }
 0x1f0   : > { %v4322_v57 = vadd.f32 %v1706_v63, %v1461_v5  ;;  %v4563_v63 = vld [vmem:[#allocation10_spill] sm:$0xff] }
 0x1f1   : > { %v855_v24 = vpop.f32.mrf.mxu1  ;;  %v891_v43 = vadd.f32 %v853_v40, %v4563_v63  ;;  %v2088_v63 = vld [vmem:[#allocation2 + $0xf0] sm:$0xff] }
 0x1f2   : > { %3321 = vmatmul.msk.bf16.gmra.mxu0 %vm170_vm1, %v4562_v38  ;;  %v892_v42 = vadd.f32 %v855_v24, %v4565_v7 }
 0x1f3   : > { %v1136_v19 = vpop.f32.mrf.mxu2 }
 0x1f4   : > { %v1176_v0 = vadd.f32 %v1136_v19, %v890_v49 }
 0x1f5   : > { %v1422_v13 = vpop.f32.mrf.mxu3 }
 0x1f6   : > { %v1462_v22 = vadd.f32 %v1422_v13, %v1176_v0 }
 0x1f7   : > { %v1713_v33 = vpop.f32.mrf.mxu0 }
 0x1f8   : > { %3287 = vmatmul.msk.bf16.gmra.mxu2 %vm170_vm1, %v2144_v8  ;;  %v4328_v23 = vadd.f32 %v1708_v15, %v1462_v22 }
 0x1f9   : > { %v858_v18 = vpop.f32.mrf.mxu1 }
 0x1fa   : > { %3304 = vmatmul.msk.bf16.gmra.mxu3 %vm170_vm1, %v4564_v3  ;;  %v893_v49 = vadd.f32 %v858_v18, %v4566_v14  ;;  %v4568_v3 = vld [vmem:[#allocation16_spill] sm:$0xff] }
 0x1fb   : > { %v1139_v12 = vpop.f32.mrf.mxu2 }
 0x1fc   : > { %v1177_v58 = vadd.f32 %v1139_v12, %v891_v43  ;;  %3271 = vmatmul.msk.bf16.gmra.mxu1 %vm170_vm1, %v4562_v38  ;;  %v4567_v38 = vld [vmem:[#allocation14_spill] sm:$0xff]  ;;  %v2089_v43 = vld [vmem:[#allocation2 + $0xf8] sm:$0xff] }
 0x1fd   : > { %v1425_v36 = vpop.f32.mrf.mxu3 }
 0x1fe   : > { %v1463_v37 = vadd.f32 %v1425_v36, %v1177_v58  ;;  %v2146_v36 = vpack.c.bf16 %v2089_v43, %v2088_v63 }
 0x1ff   : > { %v1716_v55 = vpop.f32.mrf.mxu0 }
 0x200   : > { %v4335_v28 = vadd.f32 %v1711_v52, %v1463_v37 }
 0x201   : > { %v860_v15 = vpop.f32.mrf.mxu1 }
 0x202   : > { %3322 = vmatmul.msk.bf16.gmra.mxu0 %vm170_vm1, %v4126_v39  ;;  %v894_v12 = vadd.f32 %v860_v15, %v4568_v3 }
 0x203   : > { %v1141_v40 = vpop.f32.mrf.mxu2 }
 0x204   : > { %v1178_v45 = vadd.f32 %v1141_v40, %v892_v42 }
 0x205   : > { %v1427_v47 = vpop.f32.mrf.mxu3 }
 0x206   : > { %v1464_v5 = vadd.f32 %v1427_v47, %v1178_v45  ;;  %v2090_v47 = vld [vmem:[#allocation2 + $0x108] sm:$0xff] }
 0x207   : > { %v1718_v21 = vpop.f32.mrf.mxu0 }
 0x208   : > { %3288 = vmatmul.msk.bf16.gmra.mxu2 %vm170_vm1, %v2145_v6  ;;  %v4341_v35 = vadd.f32 %v1713_v33, %v1464_v5  ;;  %v2091_v5 = vld [vmem:[#allocation2 + $0x110] sm:$0xff] }
 0x209   : > { %v1927_v52 = vpop.f32.mrf.mxu1 }
 0x20a   : > { %3305 = vmatmul.msk.bf16.gmra.mxu3 %vm170_vm1, %v4567_v38  ;;  %v2007_v7 = vadd.f32 %v1927_v52, %v4121_v56  ;;  %v4367_v52 = vld [vmem:[%s4527_s2] ss:$0 sm:$0xff]  ;;  %v2147_v38 = vpack.c.bf16 %v2091_v5, %v2090_v47 }
 0x20b   : > { %v1144_v24 = vpop.f32.mrf.mxu2 }
 0x20c   : > { %v1179_v19 = vadd.f32 %v1144_v24, %v893_v49  ;;  %3272 = vmatmul.msk.bf16.gmra.mxu1 %vm170_vm1, %v4126_v39 }
 0x20d   : > { %v1430_v0 = vpop.f32.mrf.mxu3 }
 0x20e   : > { %v1465_v8 = vadd.f32 %v1430_v0, %v1179_v19 }
 0x20f   : > { %v2786_v13 = vpop.f32.mrf.mxu0 }
 0x210   : > { %v4348_v22 = vadd.f32 %v1716_v55, %v1465_v8 }
 0x211   : > { %v1929_v33 = vpop.f32.mrf.mxu1 }
 0x212   : > { %3323 = vmatmul.msk.bf16.gmra.mxu0 %vm170_vm1, %v4144_v32 }
 0x213   : > { %v1146_v18 = vpop.f32.mrf.mxu2 }
 0x214   : > { %v1180_v58 = vadd.f32 %v1146_v18, %v894_v12 }
 0x215   : > { %v1432_v37 = vpop.f32.mrf.mxu3 }
 0x216   : > { %v1466_v4 = vadd.f32 %v1432_v37, %v1180_v58 }
 0x217   : > { %v2788_v31 = vpop.f32.mrf.mxu0 }
 0x218   : > { %3289 = vmatmul.msk.bf16.gmra.mxu2 %vm170_vm1, %v2146_v36  ;;  %v4354_v39 = vadd.f32 %v1718_v21, %v1466_v4  ;;  %v4569_v21 = vld [vmem:[#allocation17_spill] sm:$0xff] }
 0x219   : > { %v1932_v55 = vpop.f32.mrf.mxu1  ;;  %v2008_v49 = vadd.f32 %v1929_v33, %v4569_v21 }
 0x21a   : > { %3306 = vmatmul.msk.bf16.gmra.mxu3 %vm170_vm1, %v4119_v26  ;;  %v2009_v33 = vadd.f32 %v1932_v55, %v4139_v10  ;;  %v2093_v10 = vld [vmem:[#allocation2 + $0x128] sm:$0xff] }
 0x21b   : > { %v2214_v15 = vpop.f32.mrf.mxu2 }
 0x21c   : > { %v2294_v42 = vadd.f32 %v2214_v15, %v2007_v7  ;;  %3273 = vmatmul.msk.bf16.gmra.mxu1 %vm170_vm1, %v4144_v32  ;;  %v2092_v7 = vld [vmem:[#allocation2 + $0x120] sm:$0xff]  ;;  %v4570_v15 = vld [vmem:[#allocation18_spill] sm:$0xff] }
 0x21d   : > { %v2500_v40 = vpop.f32.mrf.mxu3 }
 0x21e   : > { %v2580_v6 = vadd.f32 %v2500_v40, %v2294_v42 }
 0x21f   : > { %v2791_v45 = vpop.f32.mrf.mxu0 }
 0x220   : > { %v2866_v26 = vadd.f32 %v2786_v13, %v2580_v6 }
 0x221   : > { %v1934_v14 = vpop.f32.mrf.mxu1 }
 0x222   : > { %3324 = vmatmul.msk.bf16.gmra.mxu0 %vm170_vm1, %v4162_v46  ;;  %v2966_v8 = vadd.f32 %v4367_v52, %v2866_v26 }
 0x223   : > { %v2216_v56 = vpop.f32.mrf.mxu2 }
 0x224   : > { %v2295_v32 = vadd.f32 %v2216_v56, %v2008_v49  ;;  %v2998_v12 = vmax.f32 %v2966_v8, 0.0 }
 0x225   : > { %v2502_v24 = vpop.f32.mrf.mxu3 }
 0x226   : > { %v2581_v19 = vadd.f32 %v2502_v24, %v2295_v32 }
 0x227   : > { %v2793_v0 = vpop.f32.mrf.mxu0 }
 0x228   : > { %v2867_v63 = vadd.f32 %v2788_v31, %v2581_v19  ;;  %3290 = vmatmul.msk.bf16.gmra.mxu2 %vm170_vm1, %v2147_v38  ;;  %v4571_v38 = vld [vmem:[#allocation19_spill] sm:$0xff] }
 0x229   : > { %v1937_v43 = vpop.f32.mrf.mxu1 }
 0x22a   : > { %v2967_v13 = vadd.f32 %v4367_v52, %v2867_v63  ;;  %3307 = vmatmul.msk.bf16.gmra.mxu3 %vm170_vm1, %v4137_v34  ;;  %v2010_v34 = vadd.f32 %v1934_v14, %v4570_v15  ;;  %v2011_v14 = vadd.f32 %v1937_v43, %v4157_v62 }
 0x22b   : > { %v2219_v3 = vpop.f32.mrf.mxu2 }
 0x22c   : > { %v2999_v18 = vmax.f32 %v2967_v13, 0.0  ;;  %v2296_v58 = vadd.f32 %v2219_v3, %v2009_v33  ;;  %3274 = vmatmul.msk.bf16.gmra.mxu1 %vm170_vm1, %v4162_v46  ;;  %v2148_v46 = vpack.c.bf16 %v2093_v10, %v2092_v7  ;;  %v2094_v3 = vld [vmem:[#allocation2 + $0x138] sm:$0xff] }
 0x22d   : > { %v2505_v36 = vpop.f32.mrf.mxu3 }
 0x22e   : > { %v3405_v37 = vpack.c.bf16 %v2999_v18, %v2998_v12  ;;  %v2582_v31 = vadd.f32 %v2505_v36, %v2296_v58  ;;  %v2095_v12 = vld [vmem:[#allocation2 + $0x140] sm:$0xff]  ;;  %v4572_v58 = vld [vmem:[#allocation20_spill] sm:$0xff] }
 0x22f   : > { %v2796_v4 = vpop.f32.mrf.mxu0 }
 0x230   : > { %3406 = vst [vmem:[%s4380_s6] sm:$0xff] %v3405_v37   ;;  %v2868_v40 = vadd.f32 %v2791_v45, %v2582_v31  ;;  %v2149_v31 = vpack.c.bf16 %v2095_v12, %v2094_v3 }
 0x231   : > { %v1939_v55 = vpop.f32.mrf.mxu1 }
 0x232   : > { %3325 = vmatmul.msk.bf16.gmra.mxu0 %vm170_vm1, %v4178_v54  ;;  %v2968_v49 = vadd.f32 %v4367_v52, %v2868_v40  ;;  %v2012_v62 = vadd.f32 %v1939_v55, %v4572_v58  ;;  %v4574_v58 = vld [vmem:[#allocation22_spill] sm:$0xff] }
 0x233   : > { %v2221_v42 = vpop.f32.mrf.mxu2 }
 0x234   : > { %v2297_v6 = vadd.f32 %v2221_v42, %v2010_v34  ;;  %v3000_v24 = vmax.f32 %v2968_v49, 0.0 }
 0x235   : > { %v2507_v47 = vpop.f32.mrf.mxu3 }
 0x236   : > { %v2583_v5 = vadd.f32 %v2507_v47, %v2297_v6 }
 0x237   : > { %v2798_v21 = vpop.f32.mrf.mxu0 }
 0x238   : > { %v2869_v56 = vadd.f32 %v2793_v0, %v2583_v5  ;;  %3291 = vmatmul.msk.bf16.gmra.mxu2 %vm170_vm1, %v2148_v46 }
 0x239   : > { %v1942_v26 = vpop.f32.mrf.mxu1 }
 0x23a   : > { %v2969_v32 = vadd.f32 %v4367_v52, %v2869_v56  ;;  %3308 = vmatmul.msk.bf16.gmra.mxu3 %vm170_vm1, %v4571_v38  ;;  %v2013_v55 = vadd.f32 %v1942_v26, %v4174_v11 }
 0x23b   : > { %v2224_v45 = vpop.f32.mrf.mxu2 }
 0x23c   : > { %v3001_v19 = vmax.f32 %v2969_v32, 0.0  ;;  %v2298_v8 = vadd.f32 %v2224_v45, %v2011_v14  ;;  %3275 = vmatmul.msk.bf16.gmra.mxu1 %vm170_vm1, %v4178_v54  ;;  %v2096_v32 = vld [vmem:[#allocation2 + $0x150] sm:$0xff]  ;;  %v2097_v14 = vld [vmem:[#allocation2 + $0x158] sm:$0xff]  ;;  %v4573_v45 = vld [vmem:[#allocation21_spill] sm:$0xff] }
 0x23d   : > { %v2510_v63 = vpop.f32.mrf.mxu3 }
 0x23e   : > { %v3410_v13 = vpack.c.bf16 %v3001_v19, %v3000_v24  ;;  %v2584_v33 = vadd.f32 %v2510_v63, %v2298_v8  ;;  %v2150_v19 = vpack.c.bf16 %v2097_v14, %v2096_v32 }
 0x23f   : > { %v2801_v0 = vpop.f32.mrf.mxu0 }
 0x240   : > { %3497 = vst [vmem:[%s4380_s6 + $0x8] sm:$0xff] %v3410_v13   ;;  %v2870_v36 = vadd.f32 %v2796_v4, %v2584_v33 }
 0x241   : > { %v1944_v18 = vpop.f32.mrf.mxu1 }
 0x242   : > { %3326 = vmatmul.msk.bf16.gmra.mxu0 %vm170_vm1, %v4199_v48  ;;  %v2970_v15 = vadd.f32 %v4367_v52, %v2870_v36  ;;  %v2014_v11 = vadd.f32 %v1944_v18, %v4573_v45 }
 0x243   : > { %v2226_v43 = vpop.f32.mrf.mxu2 }
 0x244   : > { %v2299_v37 = vadd.f32 %v2226_v43, %v2012_v62  ;;  %v3002_v6 = vmax.f32 %v2970_v15, 0.0  ;;  %v2099_v15 = vld [vmem:[#allocation2 + $0x170] sm:$0xff] }
 0x245   : > { %v2512_v7 = vpop.f32.mrf.mxu3 }
 0x246   : > { %v2585_v10 = vadd.f32 %v2512_v7, %v2299_v37 }
 0x247   : > { %v2803_v54 = vpop.f32.mrf.mxu0 }
 0x248   : > { %v2871_v34 = vadd.f32 %v2798_v21, %v2585_v10  ;;  %3292 = vmatmul.msk.bf16.gmra.mxu2 %vm170_vm1, %v2149_v31 }
 0x249   : > { %v1947_v42 = vpop.f32.mrf.mxu1 }
 0x24a   : > { %v2971_v40 = vadd.f32 %v4367_v52, %v2871_v34  ;;  %3309 = vmatmul.msk.bf16.gmra.mxu3 %vm170_vm1, %v4172_v51  ;;  %v2015_v18 = vadd.f32 %v1947_v42, %v4193_v17 }
 0x24b   : > { %v2229_v4 = vpop.f32.mrf.mxu2 }
 0x24c   : > { %v3003_v46 = vmax.f32 %v2971_v40, 0.0  ;;  %v2300_v47 = vadd.f32 %v2229_v4, %v2013_v55  ;;  %3276 = vmatmul.msk.bf16.gmra.mxu1 %vm170_vm1, %v4199_v48  ;;  %v4575_v40 = vld [vmem:[#allocation23_spill] sm:$0xff] }
 0x24d   : > { %v2515_v5 = vpop.f32.mrf.mxu3 }
 0x24e   : > { %v3415_v49 = vpack.c.bf16 %v3003_v46, %v3002_v6  ;;  %v2586_v56 = vadd.f32 %v2515_v5, %v2300_v47  ;;  %v1813_v47 = vld [vmem:[#allocation2 + $0x16a] sm:$0xff] }
 0x24f   : > { %v2806_v21 = vpop.f32.mrf.mxu0 }
 0x250   : > { %3498 = vst [vmem:[%s4380_s6 + $0x10] sm:$0xff] %v3415_v49   ;;  %v2872_v26 = vadd.f32 %v2801_v0, %v2586_v56 }
 0x251   : > { %v1949_v38 = vpop.f32.mrf.mxu1 }
 0x252   : > { %3327 = vmatmul.msk.bf16.gmra.mxu0 %vm170_vm1, %v4217_v25  ;;  %v2972_v13 = vadd.f32 %v4367_v52, %v2872_v26  ;;  %v2016_v17 = vadd.f32 %v1949_v38, %v4575_v40  ;;  %v2672_v26 = vld [vmem:[#allocation2 + $0x182] sm:$0xff] }
 0x253   : > { %v2231_v51 = vpop.f32.mrf.mxu2 }
 0x254   : > { %v2301_v24 = vadd.f32 %v2231_v51, %v2014_v11  ;;  %v3004_v62 = vmax.f32 %v2972_v13, 0.0 }
 0x255   : > { %v2517_v8 = vpop.f32.mrf.mxu3 }
 0x256   : > { %v2587_v63 = vadd.f32 %v2517_v8, %v2301_v24  ;;  %v2673_v24 = vld [vmem:[#allocation2 + $0x18a] sm:$0xff] }
 0x257   : > { %v2808_v48 = vpop.f32.mrf.mxu0 }
 0x258   : > { %v2873_v33 = vadd.f32 %v2803_v54, %v2587_v63  ;;  %3293 = vmatmul.msk.bf16.gmra.mxu2 %vm170_vm1, %v2150_v19  ;;  %v2098_v54 = vld [vmem:[#allocation2 + $0x168] sm:$0xff] }
 0x259   : > { %v1952_v3 = vpop.f32.mrf.mxu1  ;;  %v2151_v6 = vpack.c.bf16 %v2099_v15, %v2098_v54 }
 0x25a   : > { %v2973_v12 = vadd.f32 %v4367_v52, %v2873_v33  ;;  %3310 = vmatmul.msk.bf16.gmra.mxu3 %vm170_vm1, %v4574_v58  ;;  %v2724_v33 = vpack.c.bf16 %v2673_v24, %v2672_v26  ;;  %v2100_v58 = vld [vmem:[#allocation2 + $0x180] sm:$0xff] }
 0x25b   : > { %v2234_v0 = vpop.f32.mrf.mxu2  ;;  %v2103_v26 = vld [vmem:[#allocation2 + $0x1a0] sm:$0xff] }
 0x25c   : > { %v3005_v43 = vmax.f32 %v2973_v12, 0.0  ;;  %v2302_v36 = vadd.f32 %v2234_v0, %v2015_v18  ;;  %3277 = vmatmul.msk.bf16.gmra.mxu1 %vm170_vm1, %v4217_v25  ;;  %v1814_v25 = vld [vmem:[#allocation2 + $0x172] sm:$0xff]  ;;  %v2101_v0 = vld [vmem:[#allocation2 + $0x188] sm:$0xff] }
 0x25d   : > { %v2520_v37 = vpop.f32.mrf.mxu3  ;;  %v1865_v14 = vpack.c.bf16 %v1814_v25, %v1813_v47  ;;  %v2152_v15 = vpack.c.bf16 %v2101_v0, %v2100_v58  ;;  %v2674_v25 = vld [vmem:[#allocation2 + $0x19a] sm:$0xff] }
 0x25e   : > { %v3420_v31 = vpack.c.bf16 %v3005_v43, %v3004_v62  ;;  %v2588_v10 = vadd.f32 %v2520_v37, %v2302_v36  ;;  %v4578_v62 = vld [vmem:[#allocation26_spill] sm:$0xff] }
 0x25f   : > { %v2811_v7 = vpop.f32.mrf.mxu0  ;;  %v2386_v37 = vld [vmem:[#allocation2 + $0x181] sm:$0xff] }
 0x260   : > { %3499 = vst [vmem:[%s4380_s6 + $0x18] sm:$0xff] %v3420_v31   ;;  %v2874_v55 = vadd.f32 %v2806_v21, %v2588_v10  ;;  %v4577_v21 = vld [vmem:[#allocation24_spill] sm:$0xff]  ;;  %v2387_v31 = vld [vmem:[#allocation2 + $0x189] sm:$0xff] }
 0x261   : > { %v1954_v34 = vpop.f32.mrf.mxu1 }
 0x262   : > { %3328 = vmatmul.msk.bf16.gmra.mxu0 %vm170_vm1, %v4232_v41  ;;  %v2974_v56 = vadd.f32 %v4367_v52, %v2874_v55  ;;  %v4576_v41 = vld [vmem:[#allocation25_spill] sm:$0xff]  ;;  %v2018_v43 = vadd.f32 %v1954_v34, %v4578_v62 }
 0x263   : > { %v2236_v42 = vpop.f32.mrf.mxu2  ;;  %v2017_v11 = vadd.f32 %v1952_v3, %v4576_v41 }
 0x264   : > { %v2303_v4 = vadd.f32 %v2236_v42, %v2016_v17  ;;  %v3006_v19 = vmax.f32 %v2974_v56, 0.0  ;;  %v2438_v42 = vpack.c.bf16 %v2387_v31, %v2386_v37 }
 0x265   : > { %v2522_v46 = vpop.f32.mrf.mxu3 }
 0x266   : > { %v2589_v5 = vadd.f32 %v2522_v46, %v2303_v4 }
 0x267   : > { %v2813_v49 = vpop.f32.mrf.mxu0 }
 0x268   : > { %v2875_v32 = vadd.f32 %v2808_v48, %v2589_v5  ;;  %3294 = vmatmul.msk.bf16.gmra.mxu2 %vm170_vm1, %v2151_v6  ;;  %v2675_v5 = vld [vmem:[#allocation2 + $0x1a2] sm:$0xff] }
 0x269   : > { %v1957_v38 = vpop.f32.mrf.mxu1  ;;  %v2725_v41 = vpack.c.bf16 %v2675_v5, %v2674_v25 }
 0x26a   : > { %v2975_v45 = vadd.f32 %v4367_v52, %v2875_v32  ;;  %3311 = vmatmul.msk.bf16.gmra.mxu3 %vm170_vm1, %v4577_v21  ;;  %v2019_v47 = vadd.f32 %v1957_v38, %v4228_v30 }
 0x26b   : > { %v2239_v51 = vpop.f32.mrf.mxu2 }
 0x26c   : > { %v3007_v8 = vmax.f32 %v2975_v45, 0.0  ;;  %v2304_v63 = vadd.f32 %v2239_v51, %v2017_v11  ;;  %3278 = vmatmul.msk.bf16.gmra.mxu1 %vm170_vm1, %v1865_v14  ;;  %v2102_v51 = vld [vmem:[#allocation2 + $0x198] sm:$0xff] }
 0x26d   : > { %v2525_v48 = vpop.f32.mrf.mxu3 }
 0x26e   : > { %v3425_v13 = vpack.c.bf16 %v3007_v8, %v3006_v19  ;;  %v2590_v18 = vadd.f32 %v2525_v48, %v2304_v63  ;;  %v2388_v19 = vld [vmem:[#allocation2 + $0x199] sm:$0xff]  ;;  %v2389_v8 = vld [vmem:[#allocation2 + $0x1a1] sm:$0xff] }
 0x26f   : > { %v2816_v12 = vpop.f32.mrf.mxu0  ;;  %v2439_v58 = vpack.c.bf16 %v2389_v8, %v2388_v19 }
 0x270   : > { %3500 = vst [vmem:[%s4380_s6 + $0x20] sm:$0xff] %v3425_v13   ;;  %v2876_v10 = vadd.f32 %v2811_v7, %v2590_v18  ;;  %v2153_v13 = vpack.c.bf16 %v2103_v26, %v2102_v51 }
 0x271   : > { %v1959_v3 = vpop.f32.mrf.mxu1 }
 0x272   : > { %3329 = vmatmul.msk.bf16.gmra.mxu0 %vm170_vm1, %v2724_v33  ;;  %v2976_v4 = vadd.f32 %v4367_v52, %v2876_v10  ;;  %v2020_v30 = vadd.f32 %v1959_v3, %v4236_v27 }
 0x273   : > { %v2241_v36 = vpop.f32.mrf.mxu2 }
 0x274   : > { %v2305_v54 = vadd.f32 %v2241_v36, %v2018_v43  ;;  %v3008_v56 = vmax.f32 %v2976_v4, 0.0 }
 0x275   : > { %v2527_v40 = vpop.f32.mrf.mxu3 }
 0x276   : > { %v2591_v17 = vadd.f32 %v2527_v40, %v2305_v54 }
 0x277   : > { %v2818_v55 = vpop.f32.mrf.mxu0 }
 0x278   : > { %v2877_v6 = vadd.f32 %v2813_v49, %v2591_v17  ;;  %3295 = vmatmul.msk.bf16.gmra.mxu2 %vm170_vm1, %v2152_v15 }
 0x279   : > { %v1962_v46 = vpop.f32.mrf.mxu1 }
 0x27a   : > { %v2977_v34 = vadd.f32 %v4367_v52, %v2877_v6  ;;  %3312 = vmatmul.msk.bf16.gmra.mxu3 %vm170_vm1, %v2438_v42  ;;  %v2021_v3 = vadd.f32 %v1962_v46, %v4242_v20 }
 0x27b   : > { %v2244_v7 = vpop.f32.mrf.mxu2 }
 0x27c   : > { %v3009_v32 = vmax.f32 %v2977_v34, 0.0  ;;  %v2306_v14 = vadd.f32 %v2244_v7, %v2019_v47  ;;  %3279 = vmatmul.msk.bf16.gmra.mxu1 %vm170_vm1, %v2724_v33 }
 0x27d   : > { %v2530_v45 = vpop.f32.mrf.mxu3 }
 0x27e   : > { %v3430_v49 = vpack.c.bf16 %v3009_v32, %v3008_v56  ;;  %v2592_v21 = vadd.f32 %v2530_v45, %v2306_v14 }
 0x27f   : > { %v2821_v11 = vpop.f32.mrf.mxu0 }
 0x280   : > { %3501 = vst [vmem:[%s4380_s6 + $0x28] sm:$0xff] %v3430_v49   ;;  %v2878_v63 = vadd.f32 %v2816_v12, %v2592_v21 }
 0x281   : > { %v1964_v24 = vpop.f32.mrf.mxu1 }
 0x282   : > { %3330 = vmatmul.msk.bf16.gmra.mxu0 %vm170_vm1, %v2725_v41  ;;  %v2978_v62 = vadd.f32 %v4367_v52, %v2878_v63 }
 0x283   : > { %v2246_v38 = vpop.f32.mrf.mxu2 }
 0x284   : > { %v2307_v48 = vadd.f32 %v2246_v38, %v2020_v30  ;;  %v3010_v37 = vmax.f32 %v2978_v62, 0.0 }
 0x285   : > { %v2532_v33 = vpop.f32.mrf.mxu3 }
 0x286   : > { %v2593_v18 = vadd.f32 %v2532_v33, %v2307_v48 }
 0x287   : > { %v2823_v0 = vpop.f32.mrf.mxu0 }
 0x288   : > { %v2879_v43 = vadd.f32 %v2818_v55, %v2593_v18  ;;  %3296 = vmatmul.msk.bf16.gmra.mxu2 %vm170_vm1, %v2153_v13  ;;  %v2022_v55 = vadd.f32 %v1964_v24, %v4249_v2 }
 0x289   : > { %v1967_v36 = vpop.f32.mrf.mxu1 }
 0x28a   : > { %v2979_v27 = vadd.f32 %v4367_v52, %v2879_v43  ;;  %3313 = vmatmul.msk.bf16.gmra.mxu3 %vm170_vm1, %v2439_v58  ;;  %v2023_v32 = vadd.f32 %v1967_v36, %v4256_v60 }
 0x28b   : > { %v2249_v12 = vpop.f32.mrf.mxu2 }
 0x28c   : > { %v3011_v31 = vmax.f32 %v2979_v27, 0.0  ;;  %v2308_v10 = vadd.f32 %v2249_v12, %v2021_v3 }
 0x28d   : > { %v2535_v54 = vpop.f32.mrf.mxu3 }
 0x28e   : > { %v3435_v15 = vpack.c.bf16 %v3011_v31, %v3010_v37  ;;  %v2594_v17 = vadd.f32 %v2535_v54, %v2308_v10 }
 0x28f   : > { %v2826_v40 = vpop.f32.mrf.mxu0 }
 0x290   : > { %3502 = vst [vmem:[%s4380_s6 + $0x30] sm:$0xff] %v3435_v15   ;;  %v2880_v6 = vadd.f32 %v2821_v11, %v2594_v17 }
 0x291   : > { %v1969_v42 = vpop.f32.mrf.mxu1 }
 0x292   : > { %v2980_v7 = vadd.f32 %v4367_v52, %v2880_v6  ;;  %v2024_v24 = vadd.f32 %v1969_v42, %v4263_v9 }
 0x293   : > { %v2251_v4 = vpop.f32.mrf.mxu2 }
 0x294   : > { %v2309_v34 = vadd.f32 %v2251_v4, %v2022_v55  ;;  %v3012_v45 = vmax.f32 %v2980_v7, 0.0 }
 0x295   : > { %v2537_v47 = vpop.f32.mrf.mxu3 }
 0x296   : > { %v2595_v20 = vadd.f32 %v2537_v47, %v2309_v34 }
 0x297   : > { %v2828_v46 = vpop.f32.mrf.mxu0 }
 0x298   : > { %v2881_v25 = vadd.f32 %v2823_v0, %v2595_v20 }
 0x299   : > { %v1972_v5 = vpop.f32.mrf.mxu1 }
 0x29a   : > { %v2981_v56 = vadd.f32 %v4367_v52, %v2881_v25  ;;  %v2025_v58 = vadd.f32 %v1972_v5, %v4270_v1 }
 0x29b   : > { %v2254_v14 = vpop.f32.mrf.mxu2 }
 0x29c   : > { %v3013_v49 = vmax.f32 %v2981_v56, 0.0  ;;  %v2310_v41 = vadd.f32 %v2254_v14, %v2023_v32 }
 0x29d   : > { %v2540_v2 = vpop.f32.mrf.mxu3 }
 0x29e   : > { %v3440_v21 = vpack.c.bf16 %v3013_v49, %v3012_v45  ;;  %v2596_v51 = vadd.f32 %v2540_v2, %v2310_v41 }
 0x29f   : > { %v2831_v11 = vpop.f32.mrf.mxu0 }
 0x2a0   : > { %3503 = vst [vmem:[%s4380_s6 + $0x38] sm:$0xff] %v3440_v21   ;;  %v2882_v38 = vadd.f32 %v2826_v40, %v2596_v51 }
 0x2a1   : > { %v1974_v26 = vpop.f32.mrf.mxu1 }
 0x2a2   : > { %v2982_v60 = vadd.f32 %v4367_v52, %v2882_v38  ;;  %v2026_v31 = vadd.f32 %v1974_v26, %v4276_v16 }
 0x2a3   : > { %v2256_v30 = vpop.f32.mrf.mxu2 }
 0x2a4   : > { %v2311_v19 = vadd.f32 %v2256_v30, %v2024_v24  ;;  %v3014_v62 = vmax.f32 %v2982_v60, 0.0 }
 0x2a5   : > { %v2542_v8 = vpop.f32.mrf.mxu3 }
 0x2a6   : > { %v2597_v63 = vadd.f32 %v2542_v8, %v2311_v19 }
 0x2a7   : > { %v2833_v48 = vpop.f32.mrf.mxu0 }
 0x2a8   : > { %v2883_v13 = vadd.f32 %v2828_v46, %v2597_v63 }
 0x2a9   : > { %v1977_v33 = vpop.f32.mrf.mxu1 }
 0x2aa   : > { %v2983_v18 = vadd.f32 %v4367_v52, %v2883_v13  ;;  %v2027_v34 = vadd.f32 %v1977_v33, %v4283_v53 }
 0x2ab   : > { %v2259_v0 = vpop.f32.mrf.mxu2 }
 0x2ac   : > { %v3015_v43 = vmax.f32 %v2983_v18, 0.0  ;;  %v2312_v36 = vadd.f32 %v2259_v0, %v2025_v58 }
 0x2ad   : > { %v2545_v9 = vpop.f32.mrf.mxu3 }
 0x2ae   : > { %v3445_v27 = vpack.c.bf16 %v3015_v43, %v3014_v62  ;;  %v2598_v12 = vadd.f32 %v2545_v9, %v2312_v36 }
 0x2af   : > { %v2836_v3 = vpop.f32.mrf.mxu0 }
 0x2b0   : > { %3504 = vst [vmem:[%s4380_s6 + $0x40] sm:$0xff] %v3445_v27   ;;  %v2884_v54 = vadd.f32 %v2831_v11, %v2598_v12 }
 0x2b1   : > { %v1979_v37 = vpop.f32.mrf.mxu1 }
 0x2b2   : > { %v2984_v1 = vadd.f32 %v4367_v52, %v2884_v54  ;;  %v2028_v14 = vadd.f32 %v1979_v37, %v4289_v29 }
 0x2b3   : > { %v2261_v10 = vpop.f32.mrf.mxu2 }
 0x2b4   : > { %v2313_v15 = vadd.f32 %v2261_v10, %v2026_v31  ;;  %v3016_v20 = vmax.f32 %v2984_v1, 0.0 }
 0x2b5   : > { %v2547_v40 = vpop.f32.mrf.mxu3 }
 0x2b6   : > { %v2599_v17 = vadd.f32 %v2547_v40, %v2313_v15 }
 0x2b7   : > { %v2838_v42 = vpop.f32.mrf.mxu0 }
 0x2b8   : > { %v2885_v55 = vadd.f32 %v2833_v48, %v2599_v17 }
 0x2b9   : > { %v1982_v4 = vpop.f32.mrf.mxu1 }
 0x2ba   : > { %v2985_v6 = vadd.f32 %v4367_v52, %v2885_v55  ;;  %v2029_v30 = vadd.f32 %v1982_v4, %v4296_v50 }
 0x2bb   : > { %v2264_v47 = vpop.f32.mrf.mxu2 }
 0x2bc   : > { %v3017_v46 = vmax.f32 %v2985_v6, 0.0  ;;  %v2314_v7 = vadd.f32 %v2264_v47, %v2027_v34 }
 0x2bd   : > { %v2550_v16 = vpop.f32.mrf.mxu3 }
 0x2be   : > { %v3450_v25 = vpack.c.bf16 %v3017_v46, %v3016_v20  ;;  %v2600_v56 = vadd.f32 %v2550_v16, %v2314_v7 }
 0x2bf   : > { %v2841_v5 = vpop.f32.mrf.mxu0 }
 0x2c0   : > { %3505 = vst [vmem:[%s4380_s6 + $0x48] sm:$0xff] %v3450_v25   ;;  %v2886_v49 = vadd.f32 %v2836_v3, %v2600_v56 }
 0x2c1   : > { %v1984_v32 = vpop.f32.mrf.mxu1 }
 0x2c2   : > { %v2986_v53 = vadd.f32 %v4367_v52, %v2886_v49  ;;  %v2030_v33 = vadd.f32 %v1984_v32, %v4302_v44 }
 0x2c3   : > { %v2266_v45 = vpop.f32.mrf.mxu2 }
 0x2c4   : > { %v2315_v41 = vadd.f32 %v2266_v45, %v2028_v14  ;;  %v3018_v19 = vmax.f32 %v2986_v53, 0.0 }
 0x2c5   : > { %v2552_v2 = vpop.f32.mrf.mxu3 }
 0x2c6   : > { %v2601_v21 = vadd.f32 %v2552_v2, %v2315_v41 }
 0x2c7   : > { %v2843_v11 = vpop.f32.mrf.mxu0 }
 0x2c8   : > { %v2887_v51 = vadd.f32 %v2838_v42, %v2601_v21 }
 0x2c9   : > { %v1987_v26 = vpop.f32.mrf.mxu1 }
 0x2ca   : > { %v2987_v24 = vadd.f32 %v4367_v52, %v2887_v51  ;;  %v2031_v3 = vadd.f32 %v1987_v26, %v4309_v59 }
 0x2cb   : > { %v2269_v38 = vpop.f32.mrf.mxu2 }
 0x2cc   : > { %v3019_v8 = vmax.f32 %v2987_v24, 0.0  ;;  %v2316_v63 = vadd.f32 %v2269_v38, %v2029_v30 }
 0x2cd   : > { %v2555_v29 = vpop.f32.mrf.mxu3 }
 0x2ce   : > { %v3455_v48 = vpack.c.bf16 %v3019_v8, %v3018_v19  ;;  %v2602_v60 = vadd.f32 %v2555_v29, %v2316_v63 }
 0x2cf   : > { %v2846_v13 = vpop.f32.mrf.mxu0 }
 0x2d0   : > { %3506 = vst [vmem:[%s4380_s6 + $0x50] sm:$0xff] %v3455_v48   ;;  %v2888_v0 = vadd.f32 %v2841_v5, %v2602_v60 }
 0x2d1   : > { %v1989_v58 = vpop.f32.mrf.mxu1 }
 0x2d2   : > { %v2988_v50 = vadd.f32 %v4367_v52, %v2888_v0  ;;  %v2032_v42 = vadd.f32 %v1989_v58, %v4315_v61 }
 0x2d3   : > { %v2271_v18 = vpop.f32.mrf.mxu2 }
 0x2d4   : > { %v2317_v62 = vadd.f32 %v2271_v18, %v2030_v33  ;;  %v3020_v31 = vmax.f32 %v2988_v50, 0.0 }
 0x2d5   : > { %v2557_v43 = vpop.f32.mrf.mxu3 }
 0x2d6   : > { %v2603_v36 = vadd.f32 %v2557_v43, %v2317_v62 }
 0x2d7   : > { %v2848_v37 = vpop.f32.mrf.mxu0 }
 0x2d8   : > { %v2889_v9 = vadd.f32 %v2843_v11, %v2603_v36 }
 0x2d9   : > { %v1992_v15 = vpop.f32.mrf.mxu1 }
 0x2da   : > { %v2989_v27 = vadd.f32 %v4367_v52, %v2889_v9  ;;  %v2033_v16 = vadd.f32 %v1992_v15, %v4322_v57 }
 0x2db   : > { %v2274_v12 = vpop.f32.mrf.mxu2 }
 0x2dc   : > { %v3021_v10 = vmax.f32 %v2989_v27, 0.0  ;;  %v2318_v54 = vadd.f32 %v2274_v12, %v2031_v3 }
 0x2dd   : > { %v2560_v44 = vpop.f32.mrf.mxu3 }
 0x2de   : > { %v3460_v40 = vpack.c.bf16 %v3021_v10, %v3020_v31  ;;  %v2604_v17 = vadd.f32 %v2560_v44, %v2318_v54 }
 0x2df   : > { %v2851_v34 = vpop.f32.mrf.mxu0 }
 0x2e0   : > { %3507 = vst [vmem:[%s4380_s6 + $0x58] sm:$0xff] %v3460_v40   ;;  %v2890_v55 = vadd.f32 %v2846_v13, %v2604_v17 }
 0x2e1   : > { %v1994_v59 = vpop.f32.mrf.mxu1 }
 0x2e2   : > { %v2990_v20 = vadd.f32 %v4367_v52, %v2890_v55  ;;  %v2034_v2 = vadd.f32 %v1994_v59, %v4328_v23 }
 0x2e3   : > { %v2276_v1 = vpop.f32.mrf.mxu2 }
 0x2e4   : > { %v2319_v4 = vadd.f32 %v2276_v1, %v2032_v42  ;;  %v3022_v5 = vmax.f32 %v2990_v20, 0.0 }
 0x2e5   : > { %v2562_v6 = vpop.f32.mrf.mxu3 }
 0x2e6   : > { %v2605_v47 = vadd.f32 %v2562_v6, %v2319_v4 }
 0x2e7   : > { %v2853_v45 = vpop.f32.mrf.mxu0 }
 0x2e8   : > { %v2891_v46 = vadd.f32 %v2848_v37, %v2605_v47 }
 0x2e9   : > { %v1997_v41 = vpop.f32.mrf.mxu1 }
 0x2ea   : > { %v2991_v7 = vadd.f32 %v4367_v52, %v2891_v46  ;;  %v2035_v19 = vadd.f32 %v1997_v41, %v4335_v28 }
 0x2eb   : > { %v2279_v25 = vpop.f32.mrf.mxu2 }
 0x2ec   : > { %v3023_v56 = vmax.f32 %v2991_v7, 0.0  ;;  %v2320_v32 = vadd.f32 %v2279_v25, %v2033_v16 }
 0x2ed   : > { %v2565_v61 = vpop.f32.mrf.mxu3 }
 0x2ee   : > { %v3465_v14 = vpack.c.bf16 %v3023_v56, %v3022_v5  ;;  %v2606_v49 = vadd.f32 %v2565_v61, %v2320_v32 }
 0x2ef   : > { %v2856_v30 = vpop.f32.mrf.mxu0 }
 0x2f0   : > { %3508 = vst [vmem:[%s4380_s6 + $0x60] sm:$0xff] %v3465_v14   ;;  %v2892_v11 = vadd.f32 %v2851_v34, %v2606_v49 }
 0x2f1   : > { %v1999_v63 = vpop.f32.mrf.mxu1 }
 0x2f2   : > { %v2992_v57 = vadd.f32 %v4367_v52, %v2892_v11  ;;  %v2036_v18 = vadd.f32 %v1999_v63, %v4341_v35 }
 0x2f3   : > { %v2281_v21 = vpop.f32.mrf.mxu2 }
 0x2f4   : > { %v2321_v53 = vadd.f32 %v2281_v21, %v2034_v2  ;;  %v3024_v29 = vmax.f32 %v2992_v57, 0.0 }
 0x2f5   : > { %v2567_v51 = vpop.f32.mrf.mxu3 }
 0x2f6   : > { %v2607_v26 = vadd.f32 %v2567_v51, %v2321_v53 }
 0x2f7   : > { %v2858_v58 = vpop.f32.mrf.mxu0 }
 0x2f8   : > { %v2893_v24 = vadd.f32 %v2853_v45, %v2607_v26 }
 0x2f9   : > { %v2002_v50 = vpop.f32.mrf.mxu1 }
 0x2fa   : > { %v2993_v38 = vadd.f32 %v4367_v52, %v2893_v24  ;;  %v2037_v12 = vadd.f32 %v2002_v50, %v4348_v22 }
 0x2fb   : > { %v2284_v8 = vpop.f32.mrf.mxu2 }
 0x2fc   : > { %v3025_v48 = vmax.f32 %v2993_v38, 0.0  ;;  %v2322_v60 = vadd.f32 %v2284_v8, %v2035_v19 }
 0x2fd   : > { %v2570_v23 = vpop.f32.mrf.mxu3 }
 0x2fe   : > { %v3470_v13 = vpack.c.bf16 %v3025_v48, %v3024_v29  ;;  %v2608_v33 = vadd.f32 %v2570_v23, %v2322_v60 }
 0x2ff   : > { %v2861_v54 = vpop.f32.mrf.mxu0 }
 0x300   : > { %3509 = vst [vmem:[%s4380_s6 + $0x68] sm:$0xff] %v3470_v13   ;;  %v2894_v62 = vadd.f32 %v2856_v30, %v2608_v33 }
 0x301   : > { %v2004_v40 = vpop.f32.mrf.mxu1 }
 0x302   : > { %v2994_v28 = vadd.f32 %v4367_v52, %v2894_v62  ;;  %v2038_v42 = vadd.f32 %v2004_v40, %v4354_v39 }
 0x303   : > { %v2286_v0 = vpop.f32.mrf.mxu2 }
 0x304   : > { %v2323_v43 = vadd.f32 %v2286_v0, %v2036_v18  ;;  %v3026_v31 = vmax.f32 %v2994_v28, 0.0 }
 0x305   : > { %v2572_v36 = vpop.f32.mrf.mxu3 }
 0x306   : > { %v2609_v9 = vadd.f32 %v2572_v36, %v2323_v43 }
 0x307   : > { %v2863_v34 = vpop.f32.mrf.mxu0 }
 0x308   : > { %v2895_v27 = vadd.f32 %v2858_v58, %v2609_v9 }
 0x30a   : > { %v2995_v3 = vadd.f32 %v4367_v52, %v2895_v27 }
 0x30b   : > { %v2289_v37 = vpop.f32.mrf.mxu2 }
 0x30c   : > { %v3027_v10 = vmax.f32 %v2995_v3, 0.0  ;;  %v2324_v35 = vadd.f32 %v2289_v37, %v2037_v12 }
 0x30d   : > { %v2575_v44 = vpop.f32.mrf.mxu3 }
 0x30e   : > { %v3475_v15 = vpack.c.bf16 %v3027_v10, %v3026_v31  ;;  %v2610_v17 = vadd.f32 %v2575_v44, %v2324_v35 }
 0x310   : > { %3510 = vst [vmem:[%s4380_s6 + $0x70] sm:$0xff] %v3475_v15   ;;  %v2896_v55 = vadd.f32 %v2861_v54, %v2610_v17 }
 0x312   : > { %v2996_v47 = vadd.f32 %v4367_v52, %v2896_v55 }
 0x313   : > { %v2291_v1 = vpop.f32.mrf.mxu2 }
 0x314   : > { %v2325_v4 = vadd.f32 %v2291_v1, %v2038_v42  ;;  %v3028_v39 = vmax.f32 %v2996_v47, 0.0 }
 0x315   : > { %v2577_v22 = vpop.f32.mrf.mxu3 }
 0x316   : > { %v2611_v6 = vadd.f32 %v2577_v22, %v2325_v4 }
 0x318   : > { %v2897_v59 = vadd.f32 %v2863_v34, %v2611_v6 }
 0x31a   : > { %v2997_v20 = vadd.f32 %v4367_v52, %v2897_v59 }
 0x31c   : > { %v3029_v46 = vmax.f32 %v2997_v20, 0.0 }
 0x31e   : > { %v3480_v7 = vpack.c.bf16 %v3029_v46, %v3028_v39 }
 0x320   : > { %3511 = vst [vmem:[%s4380_s6 + $0x78] sm:$0xff] %v3480_v7  }
 0x321   : > { %3585 = shalt.err (!%p3582_p3)
}
 0x322   : > { %s3623_s29 = smov 64   ;;  %s3624_s30 = smov 4  }
 0x323   : > { %3515 = dma.vmem_to_hbm [thread:$0]  (%p3683_p5), %s3108_s11, 2048, %s3110_s17, %s3095_s16, %s3623_s29, %s3623_s29, %s3624_s30  }
 0x324 PF: > { %p3521_p4 = scmp.ge.s32.totalorder %s3620_s15, 2  ;;  %s3124_s4 = sand.u32 1, %s3608_s12  }
 0x325   : > { %s3125_s5 = scalar_lea.sflag [#allocation5], %s3124_s4 }
 0x326   : > { %p3518_p7 = pnand %p3521_p4, %p3687_p6 }
 0x328   : > { %p3519_p8 = pneg %p3518_p7 }
 0x32a   : > { %3603 = dma.done.wait (%p3519_p8), %s3125_s5, 2048  }
 0x32b   : > { %3605 = vsyncadd (%p3519_p8), %s3125_s5, 4294965248  ;;  %p13_p9 = scmp.ge.s32.totalorder %s3670_s18, 4   ;;  %s4579_s12 = smov %s3612_s13 }
 0x32c   : > { %s4580_s13 = smov %s3616_s14  ;;  %s4581_s14 = smov %s3681_s21 }
 0x32d   : > { %s4582_s15 = smov %s3670_s18  ;;  %15 = sbr.rel (!%p13_p9) target bundleno = 3 (0x3), region = 77 }
 0x332   :  { %3131 = vsyncpa [#allocation5], 1 }
 0x333   :  { %3133 = vsyncpa [#allocation5 + $0x1], 1 }

</bundles_post_ra>
